<compile_context>
chip_gen: v5e
topology: v5e:2x2
jax: 0.10.0
libtpu: 0.0.40
codegen_flags: <defaults>
</compile_context>

<pallas_src>
import functools
import math

import jax
import jax.numpy as jnp
from jax.experimental import pallas as pl
from jax.experimental.pallas import tpu as pltpu

D_MODEL = 256
IN_DIM = 10 * 10          # logical input features (seq * feat)
OUT_DIM = 3               # logical outputs: weight, offset_1, offset_2
OUT_PAD = 8               # narrow head pad (3 -> 8 cols); wrapper slices back
N_HIDDEN = 7
MAX_TILE_B = 2048
COMPUTE_DTYPE = jnp.bfloat16


def _cdiv(a, b):
    return -(-a // b)


def _round_up(n, m):
    return ((n + m - 1) // m) * m


def _choose_tile_b(b):
    """Batch-tile heuristic:
      * b <= 512 : one full-batch tile (block dim == array dim is always legal).
      * b  > 512 : >= 2 tiles so the 'parallel' axis can use both v7x
        TensorCores; tiles capped at 2048 rows; rounded to 8 rows so the
        sublane constraint holds and ragged-tail waste stays tiny.
    """
    if b <= 512:
        return b
    n_tiles = max(2, _cdiv(b, MAX_TILE_B))
    return min(_round_up(_cdiv(b, n_tiles), 8), MAX_TILE_B)


def mlp_kernel(x_ref, wp_ref, bp_ref, wh_ref, bh_ref, wo_ref, bo_ref, out_ref):
    # x_ref: (tile_b, 100) f32 straight from HBM; cast to bf16 here (VPU slack),
    # no wrapper-side pad/cast pre-pass.
    x = x_ref[...].astype(COMPUTE_DTYPE)

    # Projection: (tile_b, 100) @ (100, 256); MXU accumulation in f32.
    # Mosaic zero-pads the K=100 contraction internally.
    h = jnp.dot(x, wp_ref[...], preferred_element_type=jnp.float32)
    h = jnp.maximum(h + bp_ref[...], 0.0)          # bias + ReLU in f32

    # 7 hidden layers: Linear(256,256) + ReLU, statically unrolled so the LLO
    # scheduler can overlap layers. Dropout(0.1) is eval-mode identity.
    # TODO(synk): training-mode Dropout(0.1) omitted (would need pltpu.prng_*).
    for i in range(N_HIDDEN):
        h = jnp.dot(h.astype(COMPUTE_DTYPE), wh_ref[i],
                    preferred_element_type=jnp.float32)
        h = jnp.maximum(h + bh_ref[i], 0.0)

    # Output head: (tile_b, 256) @ (256, 8) + (1, 8). The reference module
    # applies self.relu after self.out, so the final ReLU is intentional.
    o = jnp.dot(h.astype(COMPUTE_DTYPE), wo_ref[...],
                preferred_element_type=jnp.float32)
    o = jnp.maximum(o + bo_ref[...], 0.0)
    out_ref[...] = o.astype(out_ref.dtype)


@functools.partial(jax.jit, static_argnames=("tile_b",))
def mlp_2_10_forward(x, params, tile_b=None):
    """x: (B, seq, feat) with seq*feat == 100. Returns (weight, off1, off2)."""
    b, seq, feat = x.shape
    assert seq * feat == IN_DIM

    # torch's x.reshape(batch, -1): contiguous reshape (free) -- stays f32 in
    # HBM; no batch padding, no dtype pre-pass (all folded into the kernel DMA).
    x_flat = x.reshape(b, IN_DIM)

    if tile_b is None:
        tile_b = _choose_tile_b(b)
    num_tiles = _cdiv(b, tile_b)      # ragged last tile handled by Pallas

    wp, bp, wh, bh, wo, bo = params

    const2 = lambda i: (0, 0)
    const3 = lambda i: (0, 0, 0)

    rows = num_tiles * tile_b
    flops = 2 * rows * (IN_DIM * D_MODEL
                        + N_HIDDEN * D_MODEL * D_MODEL
                        + D_MODEL * OUT_PAD)
    bytes_accessed = (
        (wp.size + wh.size + wo.size) * 2          # bf16 weights (VMEM-resident)
        + (bp.size + bh.size + bo.size) * 4        # f32 biases
        + b * IN_DIM * 4                           # f32 input rows
        + b * OUT_PAD * 4)                         # narrow f32 output rows

    out = pl.pallas_call(
        mlp_kernel,
        out_shape=jax.ShapeDtypeStruct((b, OUT_PAD), jnp.float32),
        grid=(num_tiles,),
        in_specs=[
            # Activations: one batch tile per grid step (double-buffered).
            pl.BlockSpec((tile_b, IN_DIM), lambda i: (i, 0)),
            # Weights/biases: constant index_map -> fetched once, VMEM-resident.
            pl.BlockSpec((IN_DIM, D_MODEL), const2),
            pl.BlockSpec((1, D_MODEL), const2),
            pl.BlockSpec((N_HIDDEN, D_MODEL, D_MODEL), const3),
            pl.BlockSpec((N_HIDDEN, 1, D_MODEL), const3),
            pl.BlockSpec((D_MODEL, OUT_PAD), const2),
            pl.BlockSpec((1, OUT_PAD), const2),
        ],
        out_specs=pl.BlockSpec((tile_b, OUT_PAD), lambda i: (i, 0)),
        compiler_params=pltpu.CompilerParams(
            dimension_semantics=("parallel",),
            vmem_limit_bytes=32 * 1024 * 1024),
        cost_estimate=pl.CostEstimate(
            flops=flops, transcendentals=0, bytes_accessed=bytes_accessed),
    )(x_flat, wp, bp, wh, bh, wo, bo)

    # Narrow (B, 8) f32 output: only 3 real columns to pick out.
    weight = out[:, 0]
    offset_1 = out[:, 1]
    offset_2 = out[:, 2]
    return weight, offset_1, offset_2


def init_params(key):
    """Deterministic PyTorch-Linear-style init, pre-transposed to (in, out).
    Weights cast to bf16 (MXU), biases kept f32; head zero-padded 3 -> 8."""
    keys = jax.random.split(key, 2 * (2 + N_HIDDEN))

    def linear_init(kw, kb, fan_in, fan_out):
        bound = 1.0 / math.sqrt(fan_in)
        w = jax.random.uniform(kw, (fan_in, fan_out), jnp.float32, -bound, bound)
        bvec = jax.random.uniform(kb, (1, fan_out), jnp.float32, -bound, bound)
        return w, bvec

    # Projection: (100, 256) bf16 (unpadded; kernel contracts K=100 directly).
    wp, bp = linear_init(keys[0], keys[1], IN_DIM, D_MODEL)
    wp = wp.astype(COMPUTE_DTYPE)

    # 7 hidden layers stacked: (7, 256, 256) bf16 and (7, 1, 256) f32.
    wh_list, bh_list = [], []
    for i in range(N_HIDDEN):
        w, bvec = linear_init(keys[2 + 2 * i], keys[3 + 2 * i], D_MODEL, D_MODEL)
        wh_list.append(w.astype(COMPUTE_DTYPE))
        bh_list.append(bvec)
    wh = jnp.stack(wh_list, axis=0)
    bh = jnp.stack(bh_list, axis=0)

    # Output head: (256, 3) -> zero-pad columns to 8.
    wo, bo = linear_init(keys[-2], keys[-1], D_MODEL, OUT_DIM)
    wo = jnp.pad(wo, ((0, 0), (0, OUT_PAD - OUT_DIM))).astype(COMPUTE_DTYPE)
    bo = jnp.pad(bo, ((0, 0), (0, OUT_PAD - OUT_DIM)))  # f32

    return wp, bp, wh, bh, wo, bo


if __name__ == "__main__":
    key = jax.random.PRNGKey(0)
    k_x, k_p = jax.random.split(key)

    batch = 2
    x = jax.random.normal(k_x, (batch, 10, 10), dtype=jnp.float32)
    params = init_params(k_p)

    weight, offset_1, offset_2 = mlp_2_10_forward(x, params)
    jax.block_until_ready((weight, offset_1, offset_2))

    assert weight.shape == (batch,)
    assert offset_1.shape == (batch,)
    assert offset_2.shape == (batch,)
    print("KERNEL_OK")
</pallas_src>

<mosaic_0001>
module attributes {stable_mosaic.version = 11 : i64} {
  func.func @mlp_kernel(%arg0: i32, %arg1: memref<2x100xf32, #tpu.memory_space<vmem>>, %arg2: memref<100x256xbf16, #tpu.memory_space<vmem>>, %arg3: memref<1x256xf32, #tpu.memory_space<vmem>>, %arg4: memref<7x256x256xbf16, #tpu.memory_space<vmem>>, %arg5: memref<7x1x256xf32, #tpu.memory_space<vmem>>, %arg6: memref<256x8xbf16, #tpu.memory_space<vmem>>, %arg7: memref<1x8xf32, #tpu.memory_space<vmem>>, %arg8: memref<2x8xf32, #tpu.memory_space<vmem>>) attributes {dimension_semantics = [#tpu.dimension_semantics<parallel>], iteration_bounds = array<i64: 1>, scalar_prefetch = 0 : i64, scratch_operands = 0 : i64, tpu.core_type = #tpu.core_type<tc>, window_params = [{transform_indices = @transform_0, window_bounds = array<i64: 2, 100>}, {pipeline_mode = #tpu.pipeline_mode<synchronous>, transform_indices = @transform_1, window_bounds = array<i64: 100, 256>}, {pipeline_mode = #tpu.pipeline_mode<synchronous>, transform_indices = @transform_2, window_bounds = array<i64: 1, 256>}, {pipeline_mode = #tpu.pipeline_mode<synchronous>, transform_indices = @transform_3, window_bounds = array<i64: 7, 256, 256>}, {pipeline_mode = #tpu.pipeline_mode<synchronous>, transform_indices = @transform_4, window_bounds = array<i64: 7, 1, 256>}, {pipeline_mode = #tpu.pipeline_mode<synchronous>, transform_indices = @transform_5, window_bounds = array<i64: 256, 8>}, {pipeline_mode = #tpu.pipeline_mode<synchronous>, transform_indices = @transform_6, window_bounds = array<i64: 1, 8>}, {transform_indices = @transform_7, window_bounds = array<i64: 2, 8>}]} {
    %c0 = arith.constant 0 : index
    %c0_0 = arith.constant 0 : index
    %0 = vector.load %arg1[%c0, %c0_0] : memref<2x100xf32, #tpu.memory_space<vmem>>, vector<2x100xf32>
    %1 = arith.truncf %0 : vector<2x100xf32> to vector<2x100xbf16>
    %c0_1 = arith.constant 0 : index
    %c0_2 = arith.constant 0 : index
    %2 = vector.load %arg2[%c0_1, %c0_2] : memref<100x256xbf16, #tpu.memory_space<vmem>>, vector<100x256xbf16>
    %cst = arith.constant dense<0.000000e+00> : vector<2x256xf32>
    %3 = tpu.matmul %1, %2, %cst {dimension_numbers = #tpu.dot_dimension_numbers<[1], [0], [0], [1], [0, 0, 1, 1], [], []>} : vector<2x100xbf16>, vector<100x256xbf16>, vector<2x256xf32> -> vector<2x256xf32>
    %c0_3 = arith.constant 0 : index
    %c0_4 = arith.constant 0 : index
    %4 = vector.load %arg3[%c0_3, %c0_4] : memref<1x256xf32, #tpu.memory_space<vmem>>, vector<1x256xf32>
    %5 = vector.broadcast %4 : vector<1x256xf32> to vector<2x256xf32>
    %6 = arith.addf %3, %5 : vector<2x256xf32>
    %cst_5 = arith.constant 0.000000e+00 : f32
    %7 = vector.broadcast %cst_5 : f32 to vector<2x256xf32>
    %8 = arith.maximumf %6, %7 : vector<2x256xf32>
    %9 = arith.truncf %8 : vector<2x256xf32> to vector<2x256xbf16>
    %c0_6 = arith.constant 0 : index
    %c0_7 = arith.constant 0 : index
    %c0_8 = arith.constant 0 : index
    %10 = vector.load %arg4[%c0_6, %c0_7, %c0_8] : memref<7x256x256xbf16, #tpu.memory_space<vmem>>, vector<1x256x256xbf16>
    %11 = vector.shape_cast %10 : vector<1x256x256xbf16> to vector<256x256xbf16>
    %cst_9 = arith.constant dense<0.000000e+00> : vector<2x256xf32>
    %12 = tpu.matmul %9, %11, %cst_9 {dimension_numbers = #tpu.dot_dimension_numbers<[1], [0], [0], [1], [0, 0, 1, 1], [], []>} : vector<2x256xbf16>, vector<256x256xbf16>, vector<2x256xf32> -> vector<2x256xf32>
    %c0_10 = arith.constant 0 : index
    %c0_11 = arith.constant 0 : index
    %c0_12 = arith.constant 0 : index
    %13 = vector.load %arg5[%c0_10, %c0_11, %c0_12] : memref<7x1x256xf32, #tpu.memory_space<vmem>>, vector<1x1x256xf32>
    %14 = vector.shape_cast %13 : vector<1x1x256xf32> to vector<1x256xf32>
    %15 = vector.broadcast %14 : vector<1x256xf32> to vector<2x256xf32>
    %16 = arith.addf %12, %15 : vector<2x256xf32>
    %cst_13 = arith.constant 0.000000e+00 : f32
    %17 = vector.broadcast %cst_13 : f32 to vector<2x256xf32>
    %18 = arith.maximumf %16, %17 : vector<2x256xf32>
    %19 = arith.truncf %18 : vector<2x256xf32> to vector<2x256xbf16>
    %c1 = arith.constant 1 : index
    %c0_14 = arith.constant 0 : index
    %c0_15 = arith.constant 0 : index
    %20 = vector.load %arg4[%c1, %c0_14, %c0_15] : memref<7x256x256xbf16, #tpu.memory_space<vmem>>, vector<1x256x256xbf16>
    %21 = vector.shape_cast %20 : vector<1x256x256xbf16> to vector<256x256xbf16>
    %cst_16 = arith.constant dense<0.000000e+00> : vector<2x256xf32>
    %22 = tpu.matmul %19, %21, %cst_16 {dimension_numbers = #tpu.dot_dimension_numbers<[1], [0], [0], [1], [0, 0, 1, 1], [], []>} : vector<2x256xbf16>, vector<256x256xbf16>, vector<2x256xf32> -> vector<2x256xf32>
    %c1_17 = arith.constant 1 : index
    %c0_18 = arith.constant 0 : index
    %c0_19 = arith.constant 0 : index
    %23 = vector.load %arg5[%c1_17, %c0_18, %c0_19] : memref<7x1x256xf32, #tpu.memory_space<vmem>>, vector<1x1x256xf32>
    %24 = vector.shape_cast %23 : vector<1x1x256xf32> to vector<1x256xf32>
    %25 = vector.broadcast %24 : vector<1x256xf32> to vector<2x256xf32>
    %26 = arith.addf %22, %25 : vector<2x256xf32>
    %cst_20 = arith.constant 0.000000e+00 : f32
    %27 = vector.broadcast %cst_20 : f32 to vector<2x256xf32>
    %28 = arith.maximumf %26, %27 : vector<2x256xf32>
    %29 = arith.truncf %28 : vector<2x256xf32> to vector<2x256xbf16>
    %c2 = arith.constant 2 : index
    %c0_21 = arith.constant 0 : index
    %c0_22 = arith.constant 0 : index
    %30 = vector.load %arg4[%c2, %c0_21, %c0_22] : memref<7x256x256xbf16, #tpu.memory_space<vmem>>, vector<1x256x256xbf16>
    %31 = vector.shape_cast %30 : vector<1x256x256xbf16> to vector<256x256xbf16>
    %cst_23 = arith.constant dense<0.000000e+00> : vector<2x256xf32>
    %32 = tpu.matmul %29, %31, %cst_23 {dimension_numbers = #tpu.dot_dimension_numbers<[1], [0], [0], [1], [0, 0, 1, 1], [], []>} : vector<2x256xbf16>, vector<256x256xbf16>, vector<2x256xf32> -> vector<2x256xf32>
    %c2_24 = arith.constant 2 : index
    %c0_25 = arith.constant 0 : index
    %c0_26 = arith.constant 0 : index
    %33 = vector.load %arg5[%c2_24, %c0_25, %c0_26] : memref<7x1x256xf32, #tpu.memory_space<vmem>>, vector<1x1x256xf32>
    %34 = vector.shape_cast %33 : vector<1x1x256xf32> to vector<1x256xf32>
    %35 = vector.broadcast %34 : vector<1x256xf32> to vector<2x256xf32>
    %36 = arith.addf %32, %35 : vector<2x256xf32>
    %cst_27 = arith.constant 0.000000e+00 : f32
    %37 = vector.broadcast %cst_27 : f32 to vector<2x256xf32>
    %38 = arith.maximumf %36, %37 : vector<2x256xf32>
    %39 = arith.truncf %38 : vector<2x256xf32> to vector<2x256xbf16>
    %c3 = arith.constant 3 : index
    %c0_28 = arith.constant 0 : index
    %c0_29 = arith.constant 0 : index
    %40 = vector.load %arg4[%c3, %c0_28, %c0_29] : memref<7x256x256xbf16, #tpu.memory_space<vmem>>, vector<1x256x256xbf16>
    %41 = vector.shape_cast %40 : vector<1x256x256xbf16> to vector<256x256xbf16>
    %cst_30 = arith.constant dense<0.000000e+00> : vector<2x256xf32>
    %42 = tpu.matmul %39, %41, %cst_30 {dimension_numbers = #tpu.dot_dimension_numbers<[1], [0], [0], [1], [0, 0, 1, 1], [], []>} : vector<2x256xbf16>, vector<256x256xbf16>, vector<2x256xf32> -> vector<2x256xf32>
    %c3_31 = arith.constant 3 : index
    %c0_32 = arith.constant 0 : index
    %c0_33 = arith.constant 0 : index
    %43 = vector.load %arg5[%c3_31, %c0_32, %c0_33] : memref<7x1x256xf32, #tpu.memory_space<vmem>>, vector<1x1x256xf32>
    %44 = vector.shape_cast %43 : vector<1x1x256xf32> to vector<1x256xf32>
    %45 = vector.broadcast %44 : vector<1x256xf32> to vector<2x256xf32>
    %46 = arith.addf %42, %45 : vector<2x256xf32>
    %cst_34 = arith.constant 0.000000e+00 : f32
    %47 = vector.broadcast %cst_34 : f32 to vector<2x256xf32>
    %48 = arith.maximumf %46, %47 : vector<2x256xf32>
    %49 = arith.truncf %48 : vector<2x256xf32> to vector<2x256xbf16>
    %c4 = arith.constant 4 : index
    %c0_35 = arith.constant 0 : index
    %c0_36 = arith.constant 0 : index
    %50 = vector.load %arg4[%c4, %c0_35, %c0_36] : memref<7x256x256xbf16, #tpu.memory_space<vmem>>, vector<1x256x256xbf16>
    %51 = vector.shape_cast %50 : vector<1x256x256xbf16> to vector<256x256xbf16>
    %cst_37 = arith.constant dense<0.000000e+00> : vector<2x256xf32>
    %52 = tpu.matmul %49, %51, %cst_37 {dimension_numbers = #tpu.dot_dimension_numbers<[1], [0], [0], [1], [0, 0, 1, 1], [], []>} : vector<2x256xbf16>, vector<256x256xbf16>, vector<2x256xf32> -> vector<2x256xf32>
    %c4_38 = arith.constant 4 : index
    %c0_39 = arith.constant 0 : index
    %c0_40 = arith.constant 0 : index
    %53 = vector.load %arg5[%c4_38, %c0_39, %c0_40] : memref<7x1x256xf32, #tpu.memory_space<vmem>>, vector<1x1x256xf32>
    %54 = vector.shape_cast %53 : vector<1x1x256xf32> to vector<1x256xf32>
    %55 = vector.broadcast %54 : vector<1x256xf32> to vector<2x256xf32>
    %56 = arith.addf %52, %55 : vector<2x256xf32>
    %cst_41 = arith.constant 0.000000e+00 : f32
    %57 = vector.broadcast %cst_41 : f32 to vector<2x256xf32>
    %58 = arith.maximumf %56, %57 : vector<2x256xf32>
    %59 = arith.truncf %58 : vector<2x256xf32> to vector<2x256xbf16>
    %c5 = arith.constant 5 : index
    %c0_42 = arith.constant 0 : index
    %c0_43 = arith.constant 0 : index
    %60 = vector.load %arg4[%c5, %c0_42, %c0_43] : memref<7x256x256xbf16, #tpu.memory_space<vmem>>, vector<1x256x256xbf16>
    %61 = vector.shape_cast %60 : vector<1x256x256xbf16> to vector<256x256xbf16>
    %cst_44 = arith.constant dense<0.000000e+00> : vector<2x256xf32>
    %62 = tpu.matmul %59, %61, %cst_44 {dimension_numbers = #tpu.dot_dimension_numbers<[1], [0], [0], [1], [0, 0, 1, 1], [], []>} : vector<2x256xbf16>, vector<256x256xbf16>, vector<2x256xf32> -> vector<2x256xf32>
    %c5_45 = arith.constant 5 : index
    %c0_46 = arith.constant 0 : index
    %c0_47 = arith.constant 0 : index
    %63 = vector.load %arg5[%c5_45, %c0_46, %c0_47] : memref<7x1x256xf32, #tpu.memory_space<vmem>>, vector<1x1x256xf32>
    %64 = vector.shape_cast %63 : vector<1x1x256xf32> to vector<1x256xf32>
    %65 = vector.broadcast %64 : vector<1x256xf32> to vector<2x256xf32>
    %66 = arith.addf %62, %65 : vector<2x256xf32>
    %cst_48 = arith.constant 0.000000e+00 : f32
    %67 = vector.broadcast %cst_48 : f32 to vector<2x256xf32>
    %68 = arith.maximumf %66, %67 : vector<2x256xf32>
    %69 = arith.truncf %68 : vector<2x256xf32> to vector<2x256xbf16>
    %c6 = arith.constant 6 : index
    %c0_49 = arith.constant 0 : index
    %c0_50 = arith.constant 0 : index
    %70 = vector.load %arg4[%c6, %c0_49, %c0_50] : memref<7x256x256xbf16, #tpu.memory_space<vmem>>, vector<1x256x256xbf16>
    %71 = vector.shape_cast %70 : vector<1x256x256xbf16> to vector<256x256xbf16>
    %cst_51 = arith.constant dense<0.000000e+00> : vector<2x256xf32>
    %72 = tpu.matmul %69, %71, %cst_51 {dimension_numbers = #tpu.dot_dimension_numbers<[1], [0], [0], [1], [0, 0, 1, 1], [], []>} : vector<2x256xbf16>, vector<256x256xbf16>, vector<2x256xf32> -> vector<2x256xf32>
    %c6_52 = arith.constant 6 : index
    %c0_53 = arith.constant 0 : index
    %c0_54 = arith.constant 0 : index
    %73 = vector.load %arg5[%c6_52, %c0_53, %c0_54] : memref<7x1x256xf32, #tpu.memory_space<vmem>>, vector<1x1x256xf32>
    %74 = vector.shape_cast %73 : vector<1x1x256xf32> to vector<1x256xf32>
    %75 = vector.broadcast %74 : vector<1x256xf32> to vector<2x256xf32>
    %76 = arith.addf %72, %75 : vector<2x256xf32>
    %cst_55 = arith.constant 0.000000e+00 : f32
    %77 = vector.broadcast %cst_55 : f32 to vector<2x256xf32>
    %78 = arith.maximumf %76, %77 : vector<2x256xf32>
    %79 = arith.truncf %78 : vector<2x256xf32> to vector<2x256xbf16>
    %c0_56 = arith.constant 0 : index
    %c0_57 = arith.constant 0 : index
    %80 = vector.load %arg6[%c0_56, %c0_57] : memref<256x8xbf16, #tpu.memory_space<vmem>>, vector<256x8xbf16>
    %cst_58 = arith.constant dense<0.000000e+00> : vector<2x8xf32>
    %81 = tpu.matmul %79, %80, %cst_58 {dimension_numbers = #tpu.dot_dimension_numbers<[1], [0], [0], [1], [0, 0, 1, 1], [], []>} : vector<2x256xbf16>, vector<256x8xbf16>, vector<2x8xf32> -> vector<2x8xf32>
    %c0_59 = arith.constant 0 : index
    %c0_60 = arith.constant 0 : index
    %82 = vector.load %arg7[%c0_59, %c0_60] : memref<1x8xf32, #tpu.memory_space<vmem>>, vector<1x8xf32>
    %83 = vector.broadcast %82 : vector<1x8xf32> to vector<2x8xf32>
    %84 = arith.addf %81, %83 : vector<2x8xf32>
    %cst_61 = arith.constant 0.000000e+00 : f32
    %85 = vector.broadcast %cst_61 : f32 to vector<2x8xf32>
    %86 = arith.maximumf %84, %85 : vector<2x8xf32>
    %c0_62 = arith.constant 0 : index
    %c0_63 = arith.constant 0 : index
    %87 = vector.load %arg8[%c0_62, %c0_63] : memref<2x8xf32, #tpu.memory_space<vmem>>, vector<2x8xf32>
    tpu.vector_store %arg8[%c0_62, %c0_63], %86 {strides = array<i32>} : memref<2x8xf32, #tpu.memory_space<vmem>>, vector<2x8xf32>,
    return
  }
  func.func @transform_0(%arg0: i32) -> (i32, i32) {
    %c0_i32 = arith.constant 0 : i32
    %c0_i32_0 = arith.constant 0 : i32
    return %arg0, %c0_i32 : i32, i32
  }
  func.func @transform_1(%arg0: i32) -> (i32, i32) {
    %c0_i32 = arith.constant 0 : i32
    %c0_i32_0 = arith.constant 0 : i32
    %c0_i32_1 = arith.constant 0 : i32
    return %c0_i32, %c0_i32_0 : i32, i32
  }
  func.func @transform_2(%arg0: i32) -> (i32, i32) {
    %c0_i32 = arith.constant 0 : i32
    %c0_i32_0 = arith.constant 0 : i32
    %c0_i32_1 = arith.constant 0 : i32
    return %c0_i32, %c0_i32_0 : i32, i32
  }
  func.func @transform_3(%arg0: i32) -> (i32, i32, i32) {
    %c0_i32 = arith.constant 0 : i32
    %c0_i32_0 = arith.constant 0 : i32
    %c0_i32_1 = arith.constant 0 : i32
    %c0_i32_2 = arith.constant 0 : i32
    return %c0_i32, %c0_i32_0, %c0_i32_1 : i32, i32, i32
  }
  func.func @transform_4(%arg0: i32) -> (i32, i32, i32) {
    %c0_i32 = arith.constant 0 : i32
    %c0_i32_0 = arith.constant 0 : i32
    %c0_i32_1 = arith.constant 0 : i32
    %c0_i32_2 = arith.constant 0 : i32
    return %c0_i32, %c0_i32_0, %c0_i32_1 : i32, i32, i32
  }
  func.func @transform_5(%arg0: i32) -> (i32, i32) {
    %c0_i32 = arith.constant 0 : i32
    %c0_i32_0 = arith.constant 0 : i32
    %c0_i32_1 = arith.constant 0 : i32
    return %c0_i32, %c0_i32_0 : i32, i32
  }
  func.func @transform_6(%arg0: i32) -> (i32, i32) {
    %c0_i32 = arith.constant 0 : i32
    %c0_i32_0 = arith.constant 0 : i32
    %c0_i32_1 = arith.constant 0 : i32
    return %c0_i32, %c0_i32_0 : i32, i32
  }
  func.func @transform_7(%arg0: i32) -> (i32, i32) {
    %c0_i32 = arith.constant 0 : i32
    %c0_i32_0 = arith.constant 0 : i32
    return %arg0, %c0_i32 : i32, i32
  }
}

</mosaic_0001>

<bundles_post_ra>
// kernel: mlp_2_10_forward.1
= control target key start
LH: loop header
LB: loop body
LE: loop exit
PB: predicated region body
PF: predicated region fallthrough
CT: control target
= control target key end

     0   :  { %12 = vsyncpa [#allocation3], 0  ;;  %s3424_s27 = smov [#allocation2]   ;;  %s3425_s29 = smov 128   ;;  %s3626_s0 = inlined_call_operand.vmem [shape: f32[2,100], index: 0, kind: input, shape index: {}]   ;;  %s3627_s1 = inlined_call_operand.vmem [shape: bf16[100,256], index: 1, kind: input, shape index: {}]   ;;  %s3628_s2 = inlined_call_operand.vmem [shape: f32[1,256], index: 2, kind: input, shape index: {}]   ;;  %s3629_s3 = inlined_call_operand.hbm [shape: bf16[7,256,256], index: 3, kind: input, shape index: {}]   ;;  %s3630_s4 = inlined_call_operand.vmem [shape: f32[7,1,256], index: 4, kind: input, shape index: {}]   ;;  %s3631_s5 = inlined_call_operand.vmem [shape: bf16[256,8], index: 5, kind: input, shape index: {}]   ;;  %s3632_s6 = inlined_call_operand.vmem [shape: f32[1,8], index: 6, kind: input, shape index: {}]   ;;  %s3633_s7 = inlined_call_operand.vmem [shape: f32[2,8], index: 7, kind: output, shape index: {}]  }
   0x1   :  { %s23_s26 = sshll.u32 %s3629_s3, 4  ;;  %s25_s28 = sshll.u32 %s3424_s27, 4  ;;  %s24_s26 = int_to_ptr.hbm [resolvable:$true] %s23_s26  ;;  %s26_s28 = int_to_ptr.vmem [resolvable:$true] %s25_s28 }
   0x2   :  { %s3426_s30 = smov 8  }
   0x3   :  { %31 = dma.hbm_to_vmem [thread:$0]  %s24_s26, 28672, %s26_s28, [#allocation3], %s3425_s29, %s3425_s29, %s3426_s30  }
   0x4   :  { %3422 = dma.done.wait [#allocation3], 28672  }
   0x5   :  { %3423 = vsyncadd [#allocation3], 4294938624  ;;  %v57_v0 = vld [vmem:[%s3627_s1 + $0x60] sm:$0x33]  ;;  %vm133_vm0 = vcmask 1041408   ;;  %vm129_vm1 = vcmask 818176  }
   0x6   :  { %v101_v1 = vunpack.c.l.b16 %v57_v0  ;;  %v102_v2 = vunpack.c.h.b16 %v57_v0  ;;  %v2168_v3 = vld [vmem:[%s3627_s1 + $0x50] sm:$0xf]  ;;  %v3153_v6 = vld [vmem:[%s3627_s1 + $0x54] sm:$0xf0]  ;;  %v3152_v7 = vld [vmem:[%s3627_s1 + $0x54] sm:$0xf] }
   0x7   :  { %v2170_v8 = vld [vmem:[%s3627_s1 + $0x58] sm:$0xf0]  ;;  %v2169_v11 = vor.u32 %v3153_v6, %v2168_v3  ;;  %v2160_v13 = vld [vmem:[%s3627_s1 + $0x40] sm:$0xf]  ;;  %v3151_v14 = vld [vmem:[%s3627_s1 + $0x44] sm:$0xf0] }
   0x8   :  { %v115_v4 = vpack.c.b16 %v101_v1, %v101_v1  ;;  %v116_v5 = vpack.c.b16 %v102_v2, %v102_v2  ;;  %v2173_v12 = vor.u32 %v3152_v7, %v2170_v8  ;;  %v3150_v15 = vld [vmem:[%s3627_s1 + $0x44] sm:$0xf]  ;;  %v2162_v16 = vld [vmem:[%s3627_s1 + $0x48] sm:$0xf0]  ;;  %v2234_v17 = vld [vmem:[#allocation2 + $0x70] sm:$0xf]  ;;  %v2161_v20 = vor.u32 %v3151_v14, %v2160_v13 }
   0x9   :  { %v3169_v18 = vld [vmem:[#allocation2 + $0x74] sm:$0xf0]  ;;  %v2298_v19 = vld [vmem:[#allocation2 + $0xf0] sm:$0xf]  ;;  %v2165_v21 = vor.u32 %v3150_v15, %v2162_v16  ;;  %v3148_v26 = vld [vmem:[%s3627_s1 + $0x34] sm:$0xf] }
   0xa   :  { %v135_v9 = vsel %vm133_vm0, %v115_v4, 0  ;;  %v138_v10 = vsel %vm133_vm0, %v116_v5, 0  ;;  %v2152_v22 = vld [vmem:[%s3627_s1 + $0x30] sm:$0xf]  ;;  %v3149_v23 = vld [vmem:[%s3627_s1 + $0x34] sm:$0xf0]  ;;  %v2235_v24 = vor.u32 %v3169_v18, %v2234_v17 }
   0xb   :  { %141 = vmatpush.bf16.msra.mxu0 %v135_v9  ;;  %154 = vmatpush.bf16.msra.mxu1 %v138_v10  ;;  %v3185_v25 = vld [vmem:[#allocation2 + $0xf4] sm:$0xf0]  ;;  %v2154_v27 = vld [vmem:[%s3627_s1 + $0x38] sm:$0xf0]  ;;  %v2226_v29 = vld [vmem:[#allocation2 + $0x60] sm:$0xf]  ;;  %v2153_v37 = vor.u32 %v3149_v23, %v2152_v22 }
   0xc   :  { %v2299_v28 = vor.u32 %v3185_v25, %v2298_v19  ;;  %368 = vmatpush.bf16.msra.mxu2 %v2235_v24  ;;  %v3167_v30 = vld [vmem:[#allocation2 + $0x64] sm:$0xf0]  ;;  %v2290_v31 = vld [vmem:[#allocation2 + $0xe0] sm:$0xf]  ;;  %v2157_v38 = vor.u32 %v3148_v26, %v2154_v27  ;;  %v3146_v39 = vld [vmem:[%s3627_s1 + $0x24] sm:$0xf] }
   0xd   :  { %v3183_v32 = vld [vmem:[#allocation2 + $0xe4] sm:$0xf0]  ;;  %v2144_v33 = vld [vmem:[%s3627_s1 + $0x20] sm:$0xf]  ;;  %v2227_v35 = vor.u32 %v3167_v30, %v2226_v29  ;;  %v2218_v40 = vld [vmem:[#allocation2 + $0x50] sm:$0xf] }
   0xe   :  { %v3147_v34 = vld [vmem:[%s3627_s1 + $0x24] sm:$0xf0]  ;;  %381 = vmatpush.bf16.msra.mxu3 %v2299_v28  ;;  %v2291_v36 = vor.u32 %v3183_v32, %v2290_v31  ;;  %v3165_v41 = vld [vmem:[#allocation2 + $0x54] sm:$0xf0]  ;;  %v2146_v42 = vld [vmem:[%s3627_s1 + $0x28] sm:$0xf0] }
   0xf   :  { %142 = vmatpush.bf16.msra.mxu0 %v2169_v11  ;;  %155 = vmatpush.bf16.msra.mxu1 %v2173_v12  ;;  %v2282_v43 = vld [vmem:[#allocation2 + $0xd0] sm:$0xf]  ;;  %v3181_v44 = vld [vmem:[#allocation2 + $0xd4] sm:$0xf0]  ;;  %v2219_v45 = vor.u32 %v3165_v41, %v2218_v40  ;;  %v2210_v47 = vld [vmem:[#allocation2 + $0x40] sm:$0xf]  ;;  %v2145_v49 = vor.u32 %v3147_v34, %v2144_v33  ;;  %v2149_v50 = vor.u32 %v3146_v39, %v2146_v42 }
  0x10   :  { %369 = vmatpush.bf16.msra.mxu2 %v2227_v35  ;;  %v2283_v46 = vor.u32 %v3181_v44, %v2282_v43  ;;  %v3163_v48 = vld [vmem:[#allocation2 + $0x44] sm:$0xf0]  ;;  %v2136_v51 = vld [vmem:[%s3627_s1 + $0x10] sm:$0xf]  ;;  %v2274_v52 = vld [vmem:[#allocation2 + $0xc0] sm:$0xf] }
  0x11   :  { %v3179_v53 = vld [vmem:[#allocation2 + $0xc4] sm:$0xf0]  ;;  %v3145_v54 = vld [vmem:[%s3627_s1 + $0x14] sm:$0xf0]  ;;  %v3144_v55 = vld [vmem:[%s3627_s1 + $0x14] sm:$0xf]  ;;  %v2211_v57 = vor.u32 %v3163_v48, %v2210_v47 }
  0x12   :  { %382 = vmatpush.bf16.msra.mxu3 %v2291_v36  ;;  %v2138_v56 = vld [vmem:[%s3627_s1 + $0x18] sm:$0xf0]  ;;  %v2128_v58 = vld [vmem:[%s3627_s1] sm:$0xf]  ;;  %v2275_v59 = vor.u32 %v3179_v53, %v2274_v52  ;;  %v2202_v60 = vld [vmem:[#allocation2 + $0x30] sm:$0xf]  ;;  %v2137_v62 = vor.u32 %v3145_v54, %v2136_v51 }
  0x13   :  { %143 = vmatpush.bf16.msra.mxu0 %v2161_v20  ;;  %156 = vmatpush.bf16.msra.mxu1 %v2165_v21  ;;  %v3161_v61 = vld [vmem:[#allocation2 + $0x34] sm:$0xf0]  ;;  %v2141_v63 = vor.u32 %v3144_v55, %v2138_v56  ;;  %v3143_v0 = vld [vmem:[%s3627_s1 + $0x4] sm:$0xf0]  ;;  %v2266_v1 = vld [vmem:[#allocation2 + $0xb0] sm:$0xf] }
  0x14   :  { %370 = vmatpush.bf16.msra.mxu2 %v2219_v45  ;;  %v3177_v2 = vld [vmem:[#allocation2 + $0xb4] sm:$0xf0]  ;;  %v3142_v3 = vld [vmem:[%s3627_s1 + $0x4] sm:$0xf]  ;;  %v2130_v4 = vld [vmem:[%s3627_s1 + $0x8] sm:$0xf0]  ;;  %v2203_v9 = vor.u32 %v3161_v61, %v2202_v60  ;;  %v2129_v13 = vor.u32 %v3143_v0, %v2128_v58 }
  0x15   :  { %v3168_v5 = vld [vmem:[#allocation2 + $0x74] sm:$0xf]  ;;  %v2236_v6 = vld [vmem:[#allocation2 + $0x78] sm:$0xf0]  ;;  %v2267_v10 = vor.u32 %v3177_v2, %v2266_v1  ;;  %v2194_v11 = vld [vmem:[#allocation2 + $0x20] sm:$0xf]  ;;  %v2133_v14 = vor.u32 %v3142_v3, %v2130_v4 }
  0x16   :  { %383 = vmatpush.bf16.msra.mxu3 %v2283_v46  ;;  %v3184_v7 = vld [vmem:[#allocation2 + $0xf4] sm:$0xf]  ;;  %v2300_v8 = vld [vmem:[#allocation2 + $0xf8] sm:$0xf0]  ;;  %v3159_v12 = vld [vmem:[#allocation2 + $0x24] sm:$0xf0]  ;;  %v2239_v16 = vor.u32 %v3168_v5, %v2236_v6 }
  0x17   :  { %144 = vmatpush.bf16.msra.mxu0 %v2153_v37  ;;  %157 = vmatpush.bf16.msra.mxu1 %v2157_v38  ;;  %v43_v15 = vld [vmem:[%s3626_s0] sm:$0x3]  ;;  %v2303_v17 = vor.u32 %v3184_v7, %v2300_v8  ;;  %v3166_v18 = vld [vmem:[#allocation2 + $0x64] sm:$0xf]  ;;  %v3175_v20 = vld [vmem:[#allocation2 + $0xa4] sm:$0xf0]  ;;  %v2195_v24 = vor.u32 %v3159_v12, %v2194_v11 }
  0x18   :  { %371 = vmatpush.bf16.msra.mxu2 %v2211_v57  ;;  %v2258_v19 = vld [vmem:[#allocation2 + $0xa0] sm:$0xf]  ;;  %v2228_v21 = vld [vmem:[#allocation2 + $0x68] sm:$0xf0]  ;;  %v3182_v22 = vld [vmem:[#allocation2 + $0xe4] sm:$0xf]  ;;  %v44_v25 = vpack.c.bf16 %v43_v15, %v43_v15 }
  0x19   :  { %v2292_v23 = vld [vmem:[#allocation2 + $0xe8] sm:$0xf0]  ;;  %v2259_v26 = vor.u32 %v3175_v20, %v2258_v19  ;;  %v2231_v27 = vor.u32 %v3166_v18, %v2228_v21  ;;  %v3164_v29 = vld [vmem:[#allocation2 + $0x54] sm:$0xf]  ;;  %v2220_v30 = vld [vmem:[#allocation2 + $0x58] sm:$0xf0] }
  0x1a   :  { %384 = vmatpush.bf16.msra.mxu3 %v2275_v59  ;;  %v2295_v28 = vor.u32 %v3182_v22, %v2292_v23  ;;  %v3180_v31 = vld [vmem:[#allocation2 + $0xd4] sm:$0xf]  ;;  %v2284_v32 = vld [vmem:[#allocation2 + $0xd8] sm:$0xf0]  ;;  %v2223_v33 = vor.u32 %v3164_v29, %v2220_v30  ;;  %v3162_v35 = vld [vmem:[#allocation2 + $0x44] sm:$0xf] }
  0x1b   :  { %145 = vmatpush.bf16.msra.mxu0 %v2145_v49  ;;  %158 = vmatpush.bf16.msra.mxu1 %v2149_v50  ;;  %v2287_v34 = vor.u32 %v3180_v31, %v2284_v32  ;;  %v2212_v36 = vld [vmem:[#allocation2 + $0x48] sm:$0xf0]  ;;  %v3178_v37 = vld [vmem:[#allocation2 + $0xc4] sm:$0xf]  ;;  %v3160_v41 = vld [vmem:[#allocation2 + $0x34] sm:$0xf] }
  0x1c   :  { %372 = vmatpush.bf16.msra.mxu2 %v2203_v9  ;;  %v2276_v38 = vld [vmem:[#allocation2 + $0xc8] sm:$0xf0]  ;;  %v2215_v39 = vor.u32 %v3162_v35, %v2212_v36  ;;  %v2204_v42 = vld [vmem:[#allocation2 + $0x38] sm:$0xf0]  ;;  %v3176_v43 = vld [vmem:[#allocation2 + $0xb4] sm:$0xf] }
  0x1d   :  { %v2279_v40 = vor.u32 %v3178_v37, %v2276_v38  ;;  %v2268_v44 = vld [vmem:[#allocation2 + $0xb8] sm:$0xf0]  ;;  %v2207_v45 = vor.u32 %v3160_v41, %v2204_v42  ;;  %v3158_v47 = vld [vmem:[#allocation2 + $0x24] sm:$0xf]  ;;  %v2196_v48 = vld [vmem:[#allocation2 + $0x28] sm:$0xf0] }
  0x1e   :  { %385 = vmatpush.bf16.msra.mxu3 %v2267_v10  ;;  %v2271_v46 = vor.u32 %v3176_v43, %v2268_v44  ;;  %v3174_v49 = vld [vmem:[#allocation2 + $0xa4] sm:$0xf]  ;;  %v2260_v50 = vld [vmem:[#allocation2 + $0xa8] sm:$0xf0]  ;;  %v2199_v51 = vor.u32 %v3158_v47, %v2196_v48  ;;  %v2186_v53 = vld [vmem:[#allocation2 + $0x10] sm:$0xf] }
  0x1f   :  { %146 = vmatpush.bf16.msra.mxu0 %v2137_v62  ;;  %159 = vmatpush.bf16.msra.mxu1 %v2141_v63  ;;  %v2263_v52 = vor.u32 %v3174_v49, %v2260_v50  ;;  %v3157_v54 = vld [vmem:[#allocation2 + $0x14] sm:$0xf0]  ;;  %v2250_v55 = vld [vmem:[#allocation2 + $0x90] sm:$0xf]  ;;  %v3156_v58 = vld [vmem:[#allocation2 + $0x14] sm:$0xf] }
  0x20   :  { %373 = vmatpush.bf16.msra.mxu2 %v2195_v24  ;;  %v2187_v56 = vor.u32 %v3157_v54, %v2186_v53  ;;  %v3173_v57 = vld [vmem:[#allocation2 + $0x94] sm:$0xf0]  ;;  %v2188_v59 = vld [vmem:[#allocation2 + $0x18] sm:$0xf0]  ;;  %v3172_v62 = vld [vmem:[#allocation2 + $0x94] sm:$0xf] }
  0x21   :  { %v2251_v60 = vor.u32 %v3173_v57, %v2250_v55  ;;  %v2191_v61 = vor.u32 %v3156_v58, %v2188_v59  ;;  %v2252_v63 = vld [vmem:[#allocation2 + $0x98] sm:$0xf0]  ;;  %v2178_v1 = vld [vmem:[#allocation2] sm:$0xf]  ;;  %v3155_v2 = vld [vmem:[#allocation2 + $0x4] sm:$0xf0] }
  0x22   :  { %386 = vmatpush.bf16.msra.mxu3 %v2259_v26  ;;  %v2255_v0 = vor.u32 %v3172_v62, %v2252_v63  ;;  %v2242_v3 = vld [vmem:[#allocation2 + $0x80] sm:$0xf]  ;;  %v2179_v4 = vor.u32 %v3155_v2, %v2178_v1  ;;  %v3171_v5 = vld [vmem:[#allocation2 + $0x84] sm:$0xf0]  ;;  %v3154_v6 = vld [vmem:[#allocation2 + $0x4] sm:$0xf] }
  0x23   :  { %147 = vmatpush.bf16.msra.mxu0 %v2129_v13  ;;  %160 = vmatpush.bf16.msra.mxu1 %v2133_v14  ;;  %v2180_v7 = vld [vmem:[#allocation2 + $0x8] sm:$0xf0]  ;;  %v2243_v8 = vor.u32 %v3171_v5, %v2242_v3  ;;  %v3170_v10 = vld [vmem:[#allocation2 + $0x84] sm:$0xf]  ;;  %v2427_v13 = vld [vmem:[#allocation2 + $0x1f0] sm:$0xf] }
  0x24   :  { %374 = vmatpush.bf16.msra.mxu2 %v2187_v56  ;;  %v2183_v9 = vor.u32 %v3154_v6, %v2180_v7  ;;  %v2244_v11 = vld [vmem:[#allocation2 + $0x88] sm:$0xf0]  ;;  %v3217_v14 = vld [vmem:[#allocation2 + $0x1f4] sm:$0xf0]  ;;  %v3216_v15 = vld [vmem:[#allocation2 + $0x1f4] sm:$0xf] }
  0x25   :  { %v2247_v12 = vor.u32 %v3170_v10, %v2244_v11  ;;  %v2419_v18 = vld [vmem:[#allocation2 + $0x1e0] sm:$0xf]  ;;  %v3215_v19 = vld [vmem:[#allocation2 + $0x1e4] sm:$0xf0]  ;;  %v3214_v21 = vld [vmem:[#allocation2 + $0x1e4] sm:$0xf] }
  0x26   :  { %2174 = vmatmul.msk.bf16.vlgmr.msra.gmra.mxu0 %vm129_vm1, %v44_v25  ;;  %2175 = vmatmul.msk.bf16.vlgmr.msra.gmra.mxu1 %vm129_vm1, %v44_v25  ;;  %v2421_v22 = vld [vmem:[#allocation2 + $0x1e8] sm:$0xf0]  ;;  %v2363_v23 = vld [vmem:[#allocation2 + $0x170] sm:$0xf]  ;;  %v2420_v24 = vor.u32 %v3215_v19, %v2419_v18  ;;  %v3201_v25 = vld [vmem:[#allocation2 + $0x174] sm:$0xf0] }
  0x27   :  { %394 = vmatpush.bf16.msrb.mxu0 %v2239_v16  ;;  %407 = vmatpush.bf16.msrb.mxu1 %v2303_v17  ;;  %v2428_v16 = vor.u32 %v3217_v14, %v2427_v13  ;;  %v2429_v17 = vld [vmem:[#allocation2 + $0x1f8] sm:$0xf0]  ;;  %v3200_v26 = vld [vmem:[#allocation2 + $0x174] sm:$0xf]  ;;  %v2364_v29 = vor.u32 %v3201_v25, %v2363_v23  ;;  %v2411_v31 = vld [vmem:[#allocation2 + $0x1d0] sm:$0xf] }
  0x28   :  { %387 = vmatpush.bf16.msra.mxu3 %v2251_v60  ;;  %375 = vmatpush.bf16.msra.mxu2 %v2179_v4  ;;  %v2432_v20 = vor.u32 %v3216_v15, %v2429_v17  ;;  %v3213_v32 = vld [vmem:[#allocation2 + $0x1d4] sm:$0xf0]  ;;  %v2355_v35 = vld [vmem:[#allocation2 + $0x160] sm:$0xf]  ;;  %v3199_v36 = vld [vmem:[#allocation2 + $0x164] sm:$0xf0] }
  0x29   :  { %v2356_v37 = vor.u32 %v3199_v36, %v2355_v35  ;;  %v3198_v38 = vld [vmem:[#allocation2 + $0x164] sm:$0xf]  ;;  %v2403_v42 = vld [vmem:[#allocation2 + $0x1c0] sm:$0xf]  ;;  %v3211_v43 = vld [vmem:[#allocation2 + $0x1c4] sm:$0xf0] }
  0x2a   :  { %v3196_v47 = vld [vmem:[#allocation2 + $0x154] sm:$0xf]  ;;  %v3210_v48 = vld [vmem:[#allocation2 + $0x1c4] sm:$0xf]  ;;  %v2405_v49 = vld [vmem:[#allocation2 + $0x1c8] sm:$0xf0]  ;;  %v2404_v54 = vor.u32 %v3211_v43, %v2403_v42 }
  0x2b   :  { %395 = vmatpush.bf16.msrb.mxu0 %v2231_v27  ;;  %408 = vmatpush.bf16.msrb.mxu1 %v2295_v28  ;;  %v2365_v27 = vld [vmem:[#allocation2 + $0x178] sm:$0xf0]  ;;  %v2424_v28 = vor.u32 %v3214_v21, %v2421_v22  ;;  %v2339_v53 = vld [vmem:[#allocation2 + $0x140] sm:$0xf]  ;;  %v3195_v55 = vld [vmem:[#allocation2 + $0x144] sm:$0xf0]  ;;  %v2408_v58 = vor.u32 %v3210_v48, %v2405_v49 }
  0x2c   :  { %388 = vmatpush.bf16.msra.mxu3 %v2243_v8  ;;  %v2368_v30 = vor.u32 %v3200_v26, %v2365_v27  ;;  %624 = vmatpush.bf16.msrb.mxu2 %v2364_v29  ;;  %v2349_v50 = vld [vmem:[#allocation2 + $0x158] sm:$0xf0]  ;;  %v3194_v56 = vld [vmem:[#allocation2 + $0x144] sm:$0xf]  ;;  %v2341_v57 = vld [vmem:[#allocation2 + $0x148] sm:$0xf0]  ;;  %v2340_v63 = vor.u32 %v3195_v55, %v2339_v53 }
  0x2d   :  { %v2395_v59 = vld [vmem:[#allocation2 + $0x1b0] sm:$0xf]  ;;  %v3209_v60 = vld [vmem:[#allocation2 + $0x1b4] sm:$0xf0]  ;;  %v2397_v62 = vld [vmem:[#allocation2 + $0x1b8] sm:$0xf0] }
  0x2e   :  { %v2396_v1 = vor.u32 %v3209_v60, %v2395_v59  ;;  %v2387_v3 = vld [vmem:[#allocation2 + $0x1a0] sm:$0xf]  ;;  %v3207_v4 = vld [vmem:[#allocation2 + $0x1a4] sm:$0xf0]  ;;  %v3206_v5 = vld [vmem:[#allocation2 + $0x1a4] sm:$0xf] }
  0x2f   :  { %396 = vmatpush.bf16.msrb.mxu0 %v2223_v33  ;;  %409 = vmatpush.bf16.msrb.mxu1 %v2287_v34  ;;  %v3212_v33 = vld [vmem:[#allocation2 + $0x1d4] sm:$0xf]  ;;  %v2413_v34 = vld [vmem:[#allocation2 + $0x1d8] sm:$0xf0]  ;;  %v2389_v6 = vld [vmem:[#allocation2 + $0x1a8] sm:$0xf0]  ;;  %v2388_v8 = vor.u32 %v3207_v4, %v2387_v3 }
  0x30   :  { %637 = vmatpush.bf16.msrb.mxu3 %v2428_v16  ;;  %v2416_v44 = vor.u32 %v3212_v33, %v2413_v34  ;;  %625 = vmatpush.bf16.msrb.mxu2 %v2356_v37  ;;  %v58_v7 = vld [vmem:[%s3628_s2] sm:$0x3]  ;;  %v2331_v22 = vld [vmem:[#allocation2 + $0x130] sm:$0xf]  ;;  %v3193_v23 = vld [vmem:[#allocation2 + $0x134] sm:$0xf0] }
  0x31   :  { %v60_v10 = vperm.slane %v58_v7, 0  ;;  %v61_v11 = vperm.slane %v58_v7, 1  ;;  %v2332_v25 = vor.u32 %v3193_v23, %v2331_v22  ;;  %v2333_v26 = vld [vmem:[#allocation2 + $0x138] sm:$0xf0]  ;;  %v3205_v29 = vld [vmem:[#allocation2 + $0x194] sm:$0xf0] }
  0x32   :  { %v2323_v34 = vld [vmem:[#allocation2 + $0x120] sm:$0xf]  ;;  %v3191_v35 = vld [vmem:[#allocation2 + $0x124] sm:$0xf0]  ;;  %v3190_v36 = vld [vmem:[#allocation2 + $0x124] sm:$0xf] }
  0x33   :  { %397 = vmatpush.bf16.msrb.mxu0 %v2215_v39  ;;  %410 = vmatpush.bf16.msrb.mxu1 %v2279_v40  ;;  %v2357_v39 = vld [vmem:[#allocation2 + $0x168] sm:$0xf0]  ;;  %v2412_v40 = vor.u32 %v3213_v32, %v2411_v31  ;;  %v2381_v32 = vld [vmem:[#allocation2 + $0x198] sm:$0xf0]  ;;  %v2324_v37 = vor.u32 %v3191_v35, %v2323_v34  ;;  %v3202_v42 = vld [vmem:[#allocation2 + $0x184] sm:$0xf] }
  0x34   :  { %638 = vmatpush.bf16.msrb.mxu3 %v2420_v24  ;;  %v2360_v41 = vor.u32 %v3198_v38, %v2357_v39  ;;  %v3192_v24 = vld [vmem:[#allocation2 + $0x134] sm:$0xf]  ;;  %v2325_v38 = vld [vmem:[#allocation2 + $0x128] sm:$0xf0]  ;;  %v3187_v53 = vld [vmem:[#allocation2 + $0x104] sm:$0xf0] }
  0x35   :  { %v2336_v27 = vor.u32 %v3192_v24, %v2333_v26  ;;  %v2328_v39 = vor.u32 %v3190_v36, %v2325_v38  ;;  %v3188_v49 = vld [vmem:[#allocation2 + $0x114] sm:$0xf]  ;;  %v3249_v59 = vld [vmem:[#allocation2 + $0x2f4] sm:$0xf0]  ;;  %v2550_v3 = vld [vmem:[#allocation2 + $0x2e8] sm:$0xf0] }
  0x36   :  { %v3248_v60 = vld [vmem:[#allocation2 + $0x2f4] sm:$0xf]  ;;  %v2492_v4 = vld [vmem:[#allocation2 + $0x270] sm:$0xf]  ;;  %v2532_v23 = vld [vmem:[#allocation2 + $0x2c0] sm:$0xf] }
  0x37   :  { %398 = vmatpush.bf16.msrb.mxu0 %v2207_v45  ;;  %411 = vmatpush.bf16.msrb.mxu1 %v2271_v46  ;;  %v2347_v45 = vld [vmem:[#allocation2 + $0x150] sm:$0xf]  ;;  %v3197_v46 = vld [vmem:[#allocation2 + $0x154] sm:$0xf0]  ;;  %v3232_v7 = vld [vmem:[#allocation2 + $0x274] sm:$0xf] }
  0x38   :  { %639 = vmatpush.bf16.msrb.mxu3 %v2412_v40  ;;  %v2371_v40 = vld [vmem:[#allocation2 + $0x180] sm:$0xf]  ;;  %v3243_v24 = vld [vmem:[#allocation2 + $0x2c4] sm:$0xf0]  ;;  %v2476_v26 = vld [vmem:[#allocation2 + $0x250] sm:$0xf] }
  0x39   :  { %v2533_v34 = vor.u32 %v3243_v24, %v2532_v23  ;;  %v202_v35 = vld [vmem:[%s3630_s4] sm:$0x3]  ;;  %v3222_v23 = vld [vmem:[#allocation2 + $0x224] sm:$0xf]  ;;  %vm2119_vm2 = vcmask 58368  }
  0x3b   :  { %399 = vmatpush.bf16.msrb.mxu0 %v2199_v51  ;;  %412 = vmatpush.bf16.msrb.mxu1 %v2263_v52  ;;  %v2348_v51 = vor.u32 %v3197_v46, %v2347_v45  ;;  %v2352_v52 = vor.u32 %v3196_v47, %v2349_v50  ;;  %v2315_v46 = vld [vmem:[#allocation2 + $0x110] sm:$0xf]  ;;  %v3189_v47 = vld [vmem:[#allocation2 + $0x114] sm:$0xf0]  ;;  %v2317_v50 = vld [vmem:[#allocation2 + $0x118] sm:$0xf0] }
  0x3c   :  { %640 = vmatpush.bf16.msrb.mxu3 %v2404_v54  ;;  %v2316_v48 = vor.u32 %v3189_v47, %v2315_v46  ;;  %v3186_v54 = vld [vmem:[#allocation2 + $0x104] sm:$0xf] }
  0x3d   :  { %626 = vmatpush.bf16.msrb.mxu2 %v2348_v51  ;;  %v2320_v51 = vor.u32 %v3188_v49, %v2317_v50 }
  0x3f   :  { %400 = vmatpush.bf16.msrb.mxu0 %v2191_v61  ;;  %413 = vmatpush.bf16.msrb.mxu1 %v2255_v0  ;;  %v3208_v61 = vld [vmem:[#allocation2 + $0x1b4] sm:$0xf]  ;;  %v2344_v0 = vor.u32 %v3194_v56, %v2341_v57  ;;  %v2309_v56 = vld [vmem:[#allocation2 + $0x108] sm:$0xf0] }
  0x40   :  { %v2400_v2 = vor.u32 %v3208_v61, %v2397_v62  ;;  %641 = vmatpush.bf16.msrb.mxu3 %v2396_v1  ;;  %v2312_v57 = vor.u32 %v3186_v54, %v2309_v56  ;;  %v2558_v62 = vld [vmem:[#allocation2 + $0x2f8] sm:$0xf0]  ;;  %v3241_v56 = vld [vmem:[#allocation2 + $0x2b4] sm:$0xf0] }
  0x41   :  { %627 = vmatpush.bf16.msrb.mxu2 %v2340_v63  ;;  %v2548_v63 = vld [vmem:[#allocation2 + $0x2e0] sm:$0xf]  ;;  %v2561_v1 = vor.u32 %v3248_v60, %v2558_v62  ;;  %v3227_v62 = vld [vmem:[#allocation2 + $0x244] sm:$0xf0] }
  0x43   :  { %401 = vmatpush.bf16.msrb.mxu0 %v2183_v9  ;;  %414 = vmatpush.bf16.msrb.mxu1 %v2247_v12  ;;  %v2392_v9 = vor.u32 %v3206_v5, %v2389_v6  ;;  %v3233_v6 = vld [vmem:[#allocation2 + $0x274] sm:$0xf0] }
  0x44   :  { %642 = vmatpush.bf16.msrb.mxu3 %v2388_v8  ;;  %v2494_v8 = vld [vmem:[#allocation2 + $0x278] sm:$0xf0] }
  0x45   :  { %628 = vmatpush.bf16.msrb.mxu2 %v2332_v25 }
  0x47   :  { %663 = vmatpush.bf16.msra.mxu1 %v2432_v20  ;;  %650 = vmatpush.bf16.msra.mxu0 %v2368_v30  ;;  %v3204_v30 = vld [vmem:[#allocation2 + $0x194] sm:$0xf] }
  0x48   :  { %v2384_v33 = vor.u32 %v3204_v30, %v2381_v32  ;;  %v2534_v30 = vld [vmem:[#allocation2 + $0x2c8] sm:$0xf0] }
  0x49   :  { %629 = vmatpush.bf16.msrb.mxu2 %v2324_v37  ;;  %v205_v37 = vperm.slane %v202_v35, 1 }
  0x4b   :  { %664 = vmatpush.bf16.msra.mxu1 %v2424_v28  ;;  %651 = vmatpush.bf16.msra.mxu0 %v2360_v41  ;;  %v2379_v28 = vld [vmem:[#allocation2 + $0x190] sm:$0xf]  ;;  %v3203_v41 = vld [vmem:[#allocation2 + $0x184] sm:$0xf0] }
  0x4c   :  { %v2380_v31 = vor.u32 %v3205_v29, %v2379_v28  ;;  %v2372_v43 = vor.u32 %v3203_v41, %v2371_v40  ;;  %v3228_v28 = vld [vmem:[#allocation2 + $0x254] sm:$0xf]  ;;  %v3242_v29 = vld [vmem:[#allocation2 + $0x2c4] sm:$0xf]  ;;  %v204_v41 = vperm.slane %v202_v35, 0 }
  0x4d   :  { %630 = vmatpush.bf16.msrb.mxu2 %v2316_v48  ;;  %v2537_v36 = vor.u32 %v3242_v29, %v2534_v30  ;;  %v3234_v29 = vld [vmem:[#allocation2 + $0x284] sm:$0xf] }
  0x4e   :  { %643 = vmatpush.bf16.msrb.mxu3 %v2380_v31  ;;  %v2478_v31 = vld [vmem:[#allocation2 + $0x258] sm:$0xf0] }
  0x4f   :  { %665 = vmatpush.bf16.msra.mxu1 %v2416_v44  ;;  %652 = vmatpush.bf16.msra.mxu0 %v2352_v52  ;;  %v2373_v44 = vld [vmem:[#allocation2 + $0x188] sm:$0xf0]  ;;  %v2307_v52 = vld [vmem:[#allocation2 + $0x100] sm:$0xf] }
  0x50   :  { %v2376_v45 = vor.u32 %v3202_v42, %v2373_v44  ;;  %v2308_v55 = vor.u32 %v3187_v53, %v2307_v52 }
  0x52   :  { %644 = vmatpush.bf16.msrb.mxu3 %v2372_v43  ;;  %631 = vmatpush.bf16.msrb.mxu2 %v2308_v55  ;;  %v2524_v55 = vld [vmem:[#allocation2 + $0x2b0] sm:$0xf] }
  0x53   :  { %666 = vmatpush.bf16.msra.mxu1 %v2408_v58  ;;  %653 = vmatpush.bf16.msra.mxu0 %v2344_v0  ;;  %v2556_v58 = vld [vmem:[#allocation2 + $0x2f0] sm:$0xf]  ;;  %v3247_v0 = vld [vmem:[#allocation2 + $0x2e4] sm:$0xf0] }
  0x54   :  { %v2557_v61 = vor.u32 %v3249_v59, %v2556_v58  ;;  %v2549_v5 = vor.u32 %v3247_v0, %v2548_v63  ;;  %v2525_v58 = vor.u32 %v3241_v56, %v2524_v55  ;;  %v2526_v59 = vld [vmem:[#allocation2 + $0x2b8] sm:$0xf0]  ;;  %v3226_v63 = vld [vmem:[#allocation2 + $0x244] sm:$0xf]  ;;  %v2621_v55 = vld [vmem:[#allocation2 + $0x370] sm:$0xf] }
  0x57   :  { %667 = vmatpush.bf16.msra.mxu1 %v2400_v2  ;;  %654 = vmatpush.bf16.msra.mxu0 %v2336_v27  ;;  %v3246_v2 = vld [vmem:[#allocation2 + $0x2e4] sm:$0xf]  ;;  %v3229_v27 = vld [vmem:[#allocation2 + $0x254] sm:$0xf0] }
  0x58   :  { %v2477_v32 = vor.u32 %v3229_v27, %v2476_v26  ;;  %v2500_v27 = vld [vmem:[#allocation2 + $0x280] sm:$0xf] }
  0x5b   :  { %668 = vmatpush.bf16.msra.mxu1 %v2392_v9  ;;  %655 = vmatpush.bf16.msra.mxu0 %v2328_v39  ;;  %v2553_v9 = vor.u32 %v3246_v2, %v2550_v3  ;;  %v2516_v2 = vld [vmem:[#allocation2 + $0x2a0] sm:$0xf]  ;;  %v3239_v3 = vld [vmem:[#allocation2 + $0x2a4] sm:$0xf0] }
  0x5f   :  { %669 = vmatpush.bf16.msra.mxu1 %v2384_v33  ;;  %656 = vmatpush.bf16.msra.mxu0 %v2320_v51  ;;  %v2481_v33 = vor.u32 %v3228_v28, %v2478_v31  ;;  %v3235_v28 = vld [vmem:[#allocation2 + $0x284] sm:$0xf0]  ;;  %v2502_v31 = vld [vmem:[#allocation2 + $0x288] sm:$0xf0] }
  0x60   :  { %v2501_v30 = vor.u32 %v3235_v28, %v2500_v27 }
  0x63   :  { %670 = vmatpush.bf16.msra.mxu1 %v2376_v45  ;;  %657 = vmatpush.bf16.msra.mxu0 %v2312_v57  ;;  %v3240_v57 = vld [vmem:[#allocation2 + $0x2b4] sm:$0xf] }
  0x64   :  { %v2529_v60 = vor.u32 %v3240_v57, %v2526_v59  ;;  %v3265_v57 = vld [vmem:[#allocation2 + $0x374] sm:$0xf0]  ;;  %v2623_v59 = vld [vmem:[#allocation2 + $0x378] sm:$0xf0] }
  0xa3   :  { %v149_v12 = vpop.f32.mrf.mxu0  ;;  %v162_v13 = vpop.f32.mrf.mxu1 }
  0xa4   :  { %v150_v14 = vadd.f32 %v149_v12, %v60_v10  ;;  %v163_v15 = vadd.f32 %v162_v13, %v61_v11  ;;  %v2493_v10 = vor.u32 %v3233_v6, %v2492_v4  ;;  %v2497_v11 = vor.u32 %v3232_v7, %v2494_v8  ;;  %v2540_v12 = vld [vmem:[#allocation2 + $0x2d0] sm:$0xf]  ;;  %v3245_v13 = vld [vmem:[#allocation2 + $0x2d4] sm:$0xf0]  ;;  %v3238_v6 = vld [vmem:[#allocation2 + $0x2a4] sm:$0xf] }
  0xa5   :  { %v2518_v7 = vld [vmem:[#allocation2 + $0x2a8] sm:$0xf0] }
  0xa6   :  { %v166_v16 = vmax.f32 %v150_v14, 0.0  ;;  %v167_v17 = vmax.f32 %v163_v15, 0.0  ;;  %v3244_v14 = vld [vmem:[#allocation2 + $0x2d4] sm:$0xf]  ;;  %v2542_v15 = vld [vmem:[#allocation2 + $0x2d8] sm:$0xf0]  ;;  %v2521_v8 = vor.u32 %v3238_v6, %v2518_v7 }
  0xa7   :  { %v2545_v25 = vor.u32 %v3244_v14, %v2542_v15  ;;  %v2508_v15 = vld [vmem:[#allocation2 + $0x290] sm:$0xf]  ;;  %v3262_v6 = vld [vmem:[#allocation2 + $0x364] sm:$0xf]  ;;  %v2615_v7 = vld [vmem:[#allocation2 + $0x368] sm:$0xf0] }
  0xa8   :  { %v168_v18 = vpack.c.bf16 %v166_v16, %v166_v16  ;;  %v169_v19 = vpack.c.bf16 %v167_v17, %v167_v17  ;;  %v2484_v16 = vld [vmem:[#allocation2 + $0x260] sm:$0xf]  ;;  %v3231_v17 = vld [vmem:[#allocation2 + $0x264] sm:$0xf0] }
  0xaa   :  { %376 = vmatmul.bf16.vlgmr.msra.gmra.mxu2 %v168_v18  ;;  %389 = vmatmul.bf16.vlgmr.msra.gmra.mxu3 %v169_v19 }
  0xab   :  { %402 = vmatmul.bf16.vlgmr.msrb.gmra.mxu0 %v168_v18  ;;  %415 = vmatmul.bf16.vlgmr.msrb.gmra.mxu1 %v169_v19  ;;  %v151_v20 = vpop.f32.mrf.mxu0  ;;  %v164_v21 = vpop.f32.mrf.mxu1  ;;  %v2485_v18 = vor.u32 %v3231_v17, %v2484_v16  ;;  %v3230_v19 = vld [vmem:[#allocation2 + $0x264] sm:$0xf]  ;;  %v3237_v16 = vld [vmem:[#allocation2 + $0x294] sm:$0xf0] }
  0xac   :  { %893 = vmatpush.bf16.msra.mxu3 %v2557_v61  ;;  %919 = vmatpush.bf16.msrb.mxu1 %v2561_v1  ;;  %v2486_v20 = vld [vmem:[#allocation2 + $0x268] sm:$0xf0]  ;;  %v2541_v21 = vor.u32 %v3245_v13, %v2540_v12  ;;  %v2468_v61 = vld [vmem:[#allocation2 + $0x240] sm:$0xf]  ;;  %v2462_v13 = vld [vmem:[#allocation2 + $0x238] sm:$0xf0]  ;;  %v2509_v17 = vor.u32 %v3237_v16, %v2508_v15 }
  0xad   :  { %880 = vmatpush.bf16.msra.mxu2 %v2493_v10  ;;  %906 = vmatpush.bf16.msrb.mxu0 %v2497_v11  ;;  %v2489_v22 = vor.u32 %v3230_v19, %v2486_v20  ;;  %v2469_v0 = vor.u32 %v3227_v62, %v2468_v61  ;;  %v2470_v1 = vld [vmem:[#allocation2 + $0x248] sm:$0xf0]  ;;  %v3225_v10 = vld [vmem:[#allocation2 + $0x234] sm:$0xf0]  ;;  %v3224_v11 = vld [vmem:[#allocation2 + $0x234] sm:$0xf]  ;;  %v2622_v61 = vor.u32 %v3265_v57, %v2621_v55 }
  0xae   :  { %v2473_v4 = vor.u32 %v3226_v63, %v2470_v1  ;;  %v2465_v14 = vor.u32 %v3224_v11, %v2462_v13  ;;  %v2510_v19 = vld [vmem:[#allocation2 + $0x298] sm:$0xf0]  ;;  %v2669_v63 = vld [vmem:[#allocation2 + $0x3d0] sm:$0xf]  ;;  %v3276_v1 = vld [vmem:[#allocation2 + $0x3d4] sm:$0xf] }
  0xaf   :  { %v3275_v11 = vld [vmem:[#allocation2 + $0x3c4] sm:$0xf0]  ;;  %v2605_v13 = vld [vmem:[#allocation2 + $0x350] sm:$0xf]  ;;  %v3260_v15 = vld [vmem:[#allocation2 + $0x354] sm:$0xf] }
  0xb0   :  { %894 = vmatpush.bf16.msra.mxu3 %v2549_v5  ;;  %920 = vmatpush.bf16.msrb.mxu1 %v2553_v9  ;;  %v2517_v5 = vor.u32 %v3239_v3, %v2516_v2  ;;  %v2460_v9 = vld [vmem:[#allocation2 + $0x230] sm:$0xf]  ;;  %v2671_v2 = vld [vmem:[#allocation2 + $0x3d8] sm:$0xf0]  ;;  %v2613_v3 = vld [vmem:[#allocation2 + $0x360] sm:$0xf] }
  0xb1   :  { %881 = vmatpush.bf16.msra.mxu2 %v2485_v18  ;;  %907 = vmatpush.bf16.msrb.mxu0 %v2489_v22  ;;  %v2461_v12 = vor.u32 %v3225_v10, %v2460_v9  ;;  %v3236_v18 = vld [vmem:[#allocation2 + $0x294] sm:$0xf]  ;;  %v3223_v22 = vld [vmem:[#allocation2 + $0x224] sm:$0xf0]  ;;  %v2618_v9 = vor.u32 %v3262_v6, %v2615_v7  ;;  %v2661_v10 = vld [vmem:[#allocation2 + $0x3c0] sm:$0xf] }
  0xb2   :  { %v2513_v20 = vor.u32 %v3236_v18, %v2510_v19  ;;  %v3274_v16 = vld [vmem:[#allocation2 + $0x3c4] sm:$0xf]  ;;  %v2607_v18 = vld [vmem:[#allocation2 + $0x358] sm:$0xf0] }
  0xb3   :  { %v3270_v57 = vld [vmem:[#allocation2 + $0x3a4] sm:$0xf]  ;;  %v2639_v6 = vld [vmem:[#allocation2 + $0x398] sm:$0xf0] }
  0xb4   :  { %895 = vmatpush.bf16.msra.mxu3 %v2541_v21  ;;  %921 = vmatpush.bf16.msrb.mxu1 %v2545_v25  ;;  %v2452_v21 = vld [vmem:[#allocation2 + $0x220] sm:$0xf]  ;;  %v2454_v25 = vld [vmem:[#allocation2 + $0x228] sm:$0xf0] }
  0xb5   :  { %882 = vmatpush.bf16.msra.mxu2 %v2477_v32  ;;  %908 = vmatpush.bf16.msrb.mxu0 %v2481_v33  ;;  %v2453_v24 = vor.u32 %v3223_v22, %v2452_v21  ;;  %v2457_v26 = vor.u32 %v3222_v23, %v2454_v25  ;;  %v2505_v32 = vor.u32 %v3234_v29, %v2502_v31  ;;  %v2444_v33 = vld [vmem:[#allocation2 + $0x210] sm:$0xf]  ;;  %v2304_v21 = vld [vmem:[%s3630_s4 + $0x2] sm:$0x3] }
  0xb6   :  { %v2662_v22 = vor.u32 %v3275_v11, %v2661_v10  ;;  %v461_v25 = vperm.slane %v2304_v21, 1  ;;  %v460_v31 = vperm.slane %v2304_v21, 0  ;;  %v3254_v10 = vld [vmem:[#allocation2 + $0x324] sm:$0xf]  ;;  %v3253_v21 = vld [vmem:[#allocation2 + $0x314] sm:$0xf0] }
  0xb8   :  { %896 = vmatpush.bf16.msra.mxu3 %v2533_v34  ;;  %922 = vmatpush.bf16.msrb.mxu1 %v2537_v36  ;;  %v3221_v34 = vld [vmem:[#allocation2 + $0x214] sm:$0xf0]  ;;  %v3220_v36 = vld [vmem:[#allocation2 + $0x214] sm:$0xf] }
  0xb9   :  { %883 = vmatpush.bf16.msra.mxu2 %v2469_v0  ;;  %909 = vmatpush.bf16.msrb.mxu0 %v2473_v4  ;;  %v2445_v35 = vor.u32 %v3221_v34, %v2444_v33  ;;  %v3277_v0 = vld [vmem:[#allocation2 + $0x3d4] sm:$0xf0]  ;;  %v3263_v4 = vld [vmem:[#allocation2 + $0x364] sm:$0xf0] }
  0xbc   :  { %897 = vmatpush.bf16.msra.mxu3 %v2525_v58  ;;  %923 = vmatpush.bf16.msrb.mxu1 %v2529_v60  ;;  %v3264_v58 = vld [vmem:[#allocation2 + $0x374] sm:$0xf] }
  0xbd   :  { %884 = vmatpush.bf16.msra.mxu2 %v2461_v12  ;;  %910 = vmatpush.bf16.msrb.mxu0 %v2465_v14  ;;  %v2626_v62 = vor.u32 %v3264_v58, %v2623_v59  ;;  %v2674_v12 = vor.u32 %v3276_v1, %v2671_v2  ;;  %v3261_v14 = vld [vmem:[#allocation2 + $0x354] sm:$0xf0]  ;;  %v2647_v58 = vld [vmem:[#allocation2 + $0x3a8] sm:$0xf0]  ;;  %v2637_v2 = vld [vmem:[#allocation2 + $0x390] sm:$0xf] }
  0xbe   :  { %v2606_v19 = vor.u32 %v3261_v14, %v2605_v13  ;;  %v2650_v59 = vor.u32 %v3270_v57, %v2647_v58  ;;  %v2629_v14 = vld [vmem:[#allocation2 + $0x380] sm:$0xf]  ;;  %v3294_v57 = vld [vmem:[#allocation2 + $0x464] sm:$0xf]  ;;  %v2744_v58 = vld [vmem:[#allocation2 + $0x468] sm:$0xf0] }
  0xc0   :  { %898 = vmatpush.bf16.msra.mxu3 %v2517_v5  ;;  %924 = vmatpush.bf16.msrb.mxu1 %v2521_v8  ;;  %v2614_v5 = vor.u32 %v3263_v4, %v2613_v3  ;;  %v2670_v8 = vor.u32 %v3277_v0, %v2669_v63  ;;  %v2591_v0 = vld [vmem:[#allocation2 + $0x338] sm:$0xf0]  ;;  %v3269_v3 = vld [vmem:[#allocation2 + $0x394] sm:$0xf0] }
  0xc1   :  { %885 = vmatpush.bf16.msra.mxu2 %v2453_v24  ;;  %911 = vmatpush.bf16.msrb.mxu0 %v2457_v26  ;;  %v2638_v4 = vor.u32 %v3269_v3, %v2637_v2  ;;  %v3292_v2 = vld [vmem:[#allocation2 + $0x454] sm:$0xf]  ;;  %v3306_v3 = vld [vmem:[#allocation2 + $0x4c4] sm:$0xf] }
  0xc4   :  { %899 = vmatpush.bf16.msra.mxu3 %v2509_v17  ;;  %925 = vmatpush.bf16.msrb.mxu1 %v2513_v20  ;;  %v2663_v17 = vld [vmem:[#allocation2 + $0x3c8] sm:$0xf0]  ;;  %v2610_v20 = vor.u32 %v3260_v15, %v2607_v18  ;;  %v3267_v15 = vld [vmem:[#allocation2 + $0x384] sm:$0xf0] }
  0xc5   :  { %886 = vmatpush.bf16.msra.mxu2 %v2445_v35  ;;  %v2666_v24 = vor.u32 %v3274_v16, %v2663_v17  ;;  %v3266_v16 = vld [vmem:[#allocation2 + $0x384] sm:$0xf]  ;;  %v2630_v17 = vor.u32 %v3267_v15, %v2629_v14  ;;  %v2631_v18 = vld [vmem:[#allocation2 + $0x388] sm:$0xf0] }
  0xc8   :  { %900 = vmatpush.bf16.msra.mxu3 %v2501_v30  ;;  %926 = vmatpush.bf16.msrb.mxu1 %v2505_v32 }
 0x128   :  { %v403_v38 = vpop.f32.mrf.mxu0  ;;  %v416_v39 = vpop.f32.mrf.mxu1 }
 0x129   :  { %v404_v40 = vadd.f32 %v403_v38, %v205_v37  ;;  %v2446_v37 = vld [vmem:[#allocation2 + $0x218] sm:$0xf0] }
 0x12a   :  { %v2449_v38 = vor.u32 %v3220_v36, %v2446_v37 }
 0x12b   :  { %v417_v42 = vadd.f32 %v416_v39, %v404_v40  ;;  %v2436_v39 = vld [vmem:[#allocation2 + $0x200] sm:$0xf]  ;;  %v3219_v40 = vld [vmem:[#allocation2 + $0x204] sm:$0xf0] }
 0x12c   :  { %912 = vmatpush.bf16.msrb.mxu0 %v2449_v38 }
 0x12d   :  { %v421_v43 = vmax.f32 %v417_v42, 0.0  ;;  %v377_v44 = vpop.f32.mrf.mxu2  ;;  %v390_v45 = vpop.f32.mrf.mxu3  ;;  %v2437_v42 = vor.u32 %v3219_v40, %v2436_v39 }
 0x12e   :  { %v378_v46 = vadd.f32 %v377_v44, %v204_v41  ;;  %v3218_v41 = vld [vmem:[#allocation2 + $0x204] sm:$0xf] }
 0x12f   :  { %v423_v47 = vpack.c.bf16 %v421_v43, %v421_v43  ;;  %v2438_v43 = vld [vmem:[#allocation2 + $0x208] sm:$0xf0]  ;;  %887 = vmatpush.bf16.msra.mxu2 %v2437_v42  ;;  %v2653_v42 = vld [vmem:[#allocation2 + $0x3b0] sm:$0xf] }
 0x130   :  { %v391_v48 = vadd.f32 %v390_v45, %v378_v46  ;;  %v405_v49 = vpop.f32.mrf.mxu0  ;;  %v418_v50 = vpop.f32.mrf.mxu1  ;;  %v2441_v44 = vor.u32 %v3218_v41, %v2438_v43  ;;  %v2685_v45 = vld [vmem:[#allocation2 + $0x3f0] sm:$0xf]  ;;  %v3281_v46 = vld [vmem:[#allocation2 + $0x3f4] sm:$0xf0] }
 0x131   :  { %645 = vmatmul.bf16.vlgmr.msrb.gmra.mxu3 %v423_v47  ;;  %671 = vmatmul.bf16.vlgmr.msra.gmra.mxu1 %v423_v47  ;;  %v3280_v47 = vld [vmem:[#allocation2 + $0x3f4] sm:$0xf]  ;;  %v2687_v49 = vld [vmem:[#allocation2 + $0x3f8] sm:$0xf0]  ;;  %v2677_v50 = vld [vmem:[#allocation2 + $0x3e0] sm:$0xf] }
 0x132   :  { %v420_v51 = vmax.f32 %v391_v48, 0.0  ;;  %913 = vmatpush.bf16.msrb.mxu0 %v2441_v44  ;;  %v2686_v48 = vor.u32 %v3281_v46, %v2685_v45  ;;  %v3273_v43 = vld [vmem:[#allocation2 + $0x3b4] sm:$0xf0]  ;;  %v3272_v44 = vld [vmem:[#allocation2 + $0x3b4] sm:$0xf] }
 0x133   :  { %v2654_v45 = vor.u32 %v3273_v43, %v2653_v42  ;;  %v2655_v46 = vld [vmem:[#allocation2 + $0x3b8] sm:$0xf0]  ;;  %v2750_v42 = vld [vmem:[#allocation2 + $0x470] sm:$0xf] }
 0x134   :  { %v422_v52 = vpack.c.bf16 %v420_v51, %v420_v51  ;;  %v3279_v51 = vld [vmem:[#allocation2 + $0x3e4] sm:$0xf0]  ;;  %1149 = vmatpush.bf16.msrb.mxu3 %v2686_v48  ;;  %v2597_v48 = vld [vmem:[#allocation2 + $0x340] sm:$0xf] }
 0x135   :  { %v379_v53 = vpop.f32.mrf.mxu2  ;;  %v392_v54 = vpop.f32.mrf.mxu3  ;;  %v2678_v56 = vor.u32 %v3279_v51, %v2677_v50  ;;  %v3258_v50 = vld [vmem:[#allocation2 + $0x344] sm:$0xf] }
 0x136   :  { %632 = vmatmul.bf16.vlgmr.msrb.gmra.mxu2 %v422_v52  ;;  %658 = vmatmul.bf16.vlgmr.msra.gmra.mxu0 %v422_v52  ;;  %v2690_v52 = vor.u32 %v3280_v47, %v2687_v49  ;;  %v3278_v53 = vld [vmem:[#allocation2 + $0x3e4] sm:$0xf]  ;;  %v2679_v54 = vld [vmem:[#allocation2 + $0x3e8] sm:$0xf0]  ;;  %v2658_v47 = vor.u32 %v3272_v44, %v2655_v46  ;;  %v3259_v49 = vld [vmem:[#allocation2 + $0x344] sm:$0xf0] }
 0x137   :  { %v2682_v60 = vor.u32 %v3278_v53, %v2679_v54  ;;  %1136 = vmatpush.bf16.msrb.mxu2 %v2622_v61  ;;  %1162 = vmatpush.bf16.msra.mxu0 %v2626_v62  ;;  %v2598_v51 = vor.u32 %v3259_v49, %v2597_v48  ;;  %v2645_v53 = vld [vmem:[#allocation2 + $0x3a0] sm:$0xf]  ;;  %v3271_v54 = vld [vmem:[#allocation2 + $0x3a4] sm:$0xf0]  ;;  %v3257_v61 = vld [vmem:[#allocation2 + $0x334] sm:$0xf0] }
 0x138   :  { %1175 = vmatpush.bf16.msra.mxu1 %v2690_v52  ;;  %1150 = vmatpush.bf16.msrb.mxu3 %v2678_v56  ;;  %v2599_v52 = vld [vmem:[#allocation2 + $0x348] sm:$0xf0]  ;;  %v2646_v56 = vor.u32 %v3271_v54, %v2645_v53  ;;  %v3256_v62 = vld [vmem:[#allocation2 + $0x334] sm:$0xf]  ;;  %v3297_v44 = vld [vmem:[#allocation2 + $0x474] sm:$0xf0] }
 0x139   :  { %v2602_v55 = vor.u32 %v3258_v50, %v2599_v52  ;;  %v2594_v1 = vor.u32 %v3256_v62, %v2591_v0  ;;  %v2752_v46 = vld [vmem:[#allocation2 + $0x478] sm:$0xf0]  ;;  %v2751_v48 = vor.u32 %v3297_v44, %v2750_v42  ;;  %v2798_v50 = vld [vmem:[#allocation2 + $0x4d0] sm:$0xf]  ;;  %v3308_v52 = vld [vmem:[#allocation2 + $0x4d4] sm:$0xf] }
 0x13a   :  { %v2800_v53 = vld [vmem:[#allocation2 + $0x4d8] sm:$0xf0]  ;;  %v2742_v54 = vld [vmem:[#allocation2 + $0x460] sm:$0xf]  ;;  %v3307_v62 = vld [vmem:[#allocation2 + $0x4c4] sm:$0xf0] }
 0x13b   :  { %1137 = vmatpush.bf16.msrb.mxu2 %v2614_v5  ;;  %1163 = vmatpush.bf16.msra.mxu0 %v2618_v9  ;;  %v3268_v5 = vld [vmem:[#allocation2 + $0x394] sm:$0xf]  ;;  %v3255_v9 = vld [vmem:[#allocation2 + $0x324] sm:$0xf0]  ;;  %v2734_v0 = vld [vmem:[#allocation2 + $0x450] sm:$0xf] }
 0x13c   :  { %1176 = vmatpush.bf16.msra.mxu1 %v2682_v60  ;;  %1151 = vmatpush.bf16.msrb.mxu3 %v2670_v8  ;;  %v2589_v60 = vld [vmem:[#allocation2 + $0x330] sm:$0xf]  ;;  %v2642_v7 = vor.u32 %v3268_v5, %v2639_v6  ;;  %v2581_v8 = vld [vmem:[#allocation2 + $0x320] sm:$0xf]  ;;  %v2736_v5 = vld [vmem:[#allocation2 + $0x458] sm:$0xf0] }
 0x13d   :  { %v2590_v63 = vor.u32 %v3257_v61, %v2589_v60  ;;  %v2582_v11 = vor.u32 %v3255_v9, %v2581_v8  ;;  %v2747_v60 = vor.u32 %v3294_v57, %v2744_v58  ;;  %v2790_v61 = vld [vmem:[#allocation2 + $0x4c0] sm:$0xf]  ;;  %v2433_v9 = vld [vmem:[%s3630_s4 + $0x4] sm:$0x3]  ;;  %v2768_v57 = vld [vmem:[#allocation2 + $0x498] sm:$0xf0] }
 0x13e   :  { %v3302_v44 = vld [vmem:[#allocation2 + $0x4a4] sm:$0xf] }
 0x13f   :  { %1138 = vmatpush.bf16.msrb.mxu2 %v2606_v19  ;;  %1164 = vmatpush.bf16.msra.mxu0 %v2610_v20  ;;  %v2634_v19 = vor.u32 %v3266_v16, %v2631_v18  ;;  %v2573_v20 = vld [vmem:[#allocation2 + $0x310] sm:$0xf]  ;;  %v716_v18 = vperm.slane %v2433_v9, 0 }
 0x140   :  { %1177 = vmatpush.bf16.msra.mxu1 %v2674_v12  ;;  %1152 = vmatpush.bf16.msrb.mxu3 %v2662_v22  ;;  %v2583_v12 = vld [vmem:[#allocation2 + $0x328] sm:$0xf0]  ;;  %v2574_v22 = vor.u32 %v3253_v21, %v2573_v20 }
 0x141   :  { %v2586_v13 = vor.u32 %v3254_v10, %v2583_v12  ;;  %v2791_v10 = vor.u32 %v3307_v62, %v2790_v61  ;;  %v717_v12 = vperm.slane %v2433_v9, 1  ;;  %v3286_v61 = vld [vmem:[#allocation2 + $0x424] sm:$0xf] }
 0x143   :  { %1139 = vmatpush.bf16.msrb.mxu2 %v2598_v51  ;;  %1165 = vmatpush.bf16.msra.mxu0 %v2602_v55  ;;  %v3309_v51 = vld [vmem:[#allocation2 + $0x4d4] sm:$0xf0]  ;;  %v3295_v55 = vld [vmem:[#allocation2 + $0x464] sm:$0xf0] }
 0x144   :  { %1178 = vmatpush.bf16.msra.mxu1 %v2666_v24  ;;  %1153 = vmatpush.bf16.msrb.mxu3 %v2654_v45  ;;  %v2575_v24 = vld [vmem:[#allocation2 + $0x318] sm:$0xf0]  ;;  %v3296_v45 = vld [vmem:[#allocation2 + $0x474] sm:$0xf] }
 0x145   :  { %v2755_v49 = vor.u32 %v3296_v45, %v2752_v46  ;;  %v2776_v45 = vld [vmem:[#allocation2 + $0x4a8] sm:$0xf0] }
 0x146   :  { %v2779_v46 = vor.u32 %v3302_v44, %v2776_v45  ;;  %v3326_v44 = vld [vmem:[#allocation2 + $0x564] sm:$0xf]  ;;  %v2873_v45 = vld [vmem:[#allocation2 + $0x568] sm:$0xf0] }
 0x147   :  { %1140 = vmatpush.bf16.msrb.mxu2 %v2590_v63  ;;  %1166 = vmatpush.bf16.msra.mxu0 %v2594_v1  ;;  %v2803_v63 = vor.u32 %v3308_v52, %v2800_v53  ;;  %v3293_v1 = vld [vmem:[#allocation2 + $0x454] sm:$0xf0]  ;;  %v2766_v53 = vld [vmem:[#allocation2 + $0x490] sm:$0xf] }
 0x148   :  { %1179 = vmatpush.bf16.msra.mxu1 %v2658_v47  ;;  %1154 = vmatpush.bf16.msrb.mxu3 %v2646_v56  ;;  %v2743_v56 = vor.u32 %v3295_v55, %v2742_v54  ;;  %v2735_v6 = vor.u32 %v3293_v1, %v2734_v0  ;;  %v3301_v54 = vld [vmem:[#allocation2 + $0x494] sm:$0xf0]  ;;  %v2758_v1 = vld [vmem:[#allocation2 + $0x480] sm:$0xf] }
 0x149   :  { %v2767_v55 = vor.u32 %v3301_v54, %v2766_v53  ;;  %v3324_v53 = vld [vmem:[#allocation2 + $0x554] sm:$0xf]  ;;  %v3338_v54 = vld [vmem:[#allocation2 + $0x5c4] sm:$0xf] }
 0x14b   :  { %1141 = vmatpush.bf16.msrb.mxu2 %v2582_v11  ;;  %1167 = vmatpush.bf16.msra.mxu0 %v2586_v13 }
 0x14c   :  { %1180 = vmatpush.bf16.msra.mxu1 %v2650_v59  ;;  %1155 = vmatpush.bf16.msrb.mxu3 %v2638_v4  ;;  %v2799_v59 = vor.u32 %v3309_v51, %v2798_v50  ;;  %v2792_v4 = vld [vmem:[#allocation2 + $0x4c8] sm:$0xf0]  ;;  %v2720_v51 = vld [vmem:[#allocation2 + $0x438] sm:$0xf0] }
 0x14d   :  { %v2795_v11 = vor.u32 %v3306_v3, %v2792_v4  ;;  %v3298_v3 = vld [vmem:[#allocation2 + $0x484] sm:$0xf] }
 0x14f   :  { %1142 = vmatpush.bf16.msrb.mxu2 %v2574_v22 }
 0x150   :  { %1181 = vmatpush.bf16.msra.mxu1 %v2642_v7  ;;  %1156 = vmatpush.bf16.msrb.mxu3 %v2630_v17  ;;  %v2739_v7 = vor.u32 %v3292_v2, %v2736_v5  ;;  %v3299_v2 = vld [vmem:[#allocation2 + $0x484] sm:$0xf0]  ;;  %v2760_v5 = vld [vmem:[#allocation2 + $0x488] sm:$0xf0] }
 0x151   :  { %v2759_v4 = vor.u32 %v3299_v2, %v2758_v1 }
 0x154   :  { %1182 = vmatpush.bf16.msra.mxu1 %v2634_v19 }
 0x1ae   :  { %v672_v23 = vpop.f32.mrf.mxu1 }
 0x1b3   :  { %v659_v26 = vpop.f32.mrf.mxu0 }
 0x1b4   :  { %v646_v27 = vpop.f32.mrf.mxu3  ;;  %v660_v28 = vadd.f32 %v659_v26, %v461_v25  ;;  %v2565_v26 = vld [vmem:[#allocation2 + $0x300] sm:$0xf] }
 0x1b6   :  { %v673_v29 = vadd.f32 %v672_v23, %v660_v28  ;;  %v674_v30 = vpop.f32.mrf.mxu1  ;;  %v3252_v23 = vld [vmem:[#allocation2 + $0x314] sm:$0xf]  ;;  %v3250_v28 = vld [vmem:[#allocation2 + $0x304] sm:$0xf] }
 0x1b7   :  { %v2578_v25 = vor.u32 %v3252_v23, %v2575_v24  ;;  %v2567_v30 = vld [vmem:[#allocation2 + $0x308] sm:$0xf0] }
 0x1b8   :  { %v677_v32 = vmax.f32 %v673_v29, 0.0 }
 0x1b9   :  { %v633_v33 = vpop.f32.mrf.mxu2  ;;  %1168 = vmatpush.bf16.msra.mxu0 %v2578_v25 }
 0x1ba   :  { %v679_v34 = vpack.c.bf16 %v677_v32, %v677_v32  ;;  %v634_v35 = vadd.f32 %v633_v33, %v460_v31  ;;  %v2570_v31 = vor.u32 %v3250_v28, %v2567_v30  ;;  %v2814_v32 = vld [vmem:[#allocation2 + $0x4f0] sm:$0xf]  ;;  %v3313_v33 = vld [vmem:[#allocation2 + $0x4f4] sm:$0xf0] }
 0x1bb   :  { %v661_v36 = vpop.f32.mrf.mxu0  ;;  %v3305_v30 = vld [vmem:[#allocation2 + $0x4b4] sm:$0xf0] }
 0x1bc   :  { %v647_v37 = vadd.f32 %v646_v27, %v634_v35  ;;  %v648_v38 = vpop.f32.mrf.mxu3  ;;  %901 = vmatmul.bf16.vlgmr.msra.gmra.mxu3 %v679_v34  ;;  %927 = vmatmul.bf16.vlgmr.msrb.gmra.mxu1 %v679_v34  ;;  %v3251_v27 = vld [vmem:[#allocation2 + $0x304] sm:$0xf0]  ;;  %v3312_v34 = vld [vmem:[#allocation2 + $0x4f4] sm:$0xf]  ;;  %v2815_v35 = vor.u32 %v3313_v33, %v2814_v32  ;;  %v2816_v36 = vld [vmem:[#allocation2 + $0x4f8] sm:$0xf0] }
 0x1bd   :  { %v2566_v29 = vor.u32 %v3251_v27, %v2565_v26  ;;  %1169 = vmatpush.bf16.msra.mxu0 %v2570_v31  ;;  %v3311_v38 = vld [vmem:[#allocation2 + $0x4e4] sm:$0xf0]  ;;  %v3304_v31 = vld [vmem:[#allocation2 + $0x4b4] sm:$0xf]  ;;  %v2784_v33 = vld [vmem:[#allocation2 + $0x4b8] sm:$0xf0] }
 0x1be   :  { %v676_v39 = vmax.f32 %v647_v37, 0.0  ;;  %v2806_v37 = vld [vmem:[#allocation2 + $0x4e0] sm:$0xf]  ;;  %1405 = vmatpush.bf16.msra.mxu3 %v2815_v35 }
 0x1bf   :  { %1143 = vmatpush.bf16.msrb.mxu2 %v2566_v29  ;;  %v2807_v43 = vor.u32 %v3311_v38, %v2806_v37  ;;  %v2782_v29 = vld [vmem:[#allocation2 + $0x4b0] sm:$0xf]  ;;  %v2726_v35 = vld [vmem:[#allocation2 + $0x440] sm:$0xf]  ;;  %v3290_v37 = vld [vmem:[#allocation2 + $0x444] sm:$0xf] }
 0x1c0   :  { %v678_v40 = vpack.c.bf16 %v676_v39, %v676_v39  ;;  %v2819_v39 = vor.u32 %v3312_v34, %v2816_v36  ;;  %v2783_v32 = vor.u32 %v3305_v30, %v2782_v29  ;;  %v2787_v34 = vor.u32 %v3304_v31, %v2784_v33  ;;  %v3291_v36 = vld [vmem:[#allocation2 + $0x444] sm:$0xf0]  ;;  %v2879_v29 = vld [vmem:[#allocation2 + $0x570] sm:$0xf]  ;;  %v3329_v31 = vld [vmem:[#allocation2 + $0x574] sm:$0xf0] }
 0x1c1   :  { %v635_v41 = vpop.f32.mrf.mxu2  ;;  %v2727_v38 = vor.u32 %v3291_v36, %v2726_v35  ;;  %v2881_v33 = vld [vmem:[#allocation2 + $0x578] sm:$0xf0]  ;;  %v2880_v35 = vor.u32 %v3329_v31, %v2879_v29  ;;  %v3334_v31 = vld [vmem:[#allocation2 + $0x5a4] sm:$0xf] }
 0x1c2   :  { %888 = vmatmul.bf16.vlgmr.msra.gmra.mxu2 %v678_v40  ;;  %914 = vmatmul.bf16.vlgmr.msrb.gmra.mxu0 %v678_v40  ;;  %v3310_v40 = vld [vmem:[#allocation2 + $0x4e4] sm:$0xf]  ;;  %v2808_v41 = vld [vmem:[#allocation2 + $0x4e8] sm:$0xf0] }
 0x1c3   :  { %1431 = vmatpush.bf16.msrb.mxu1 %v2819_v39  ;;  %v2811_v47 = vor.u32 %v3310_v40, %v2808_v41  ;;  %1392 = vmatpush.bf16.msra.mxu2 %v2751_v48  ;;  %v2728_v39 = vld [vmem:[#allocation2 + $0x448] sm:$0xf0]  ;;  %v2774_v40 = vld [vmem:[#allocation2 + $0x4a0] sm:$0xf]  ;;  %v3303_v41 = vld [vmem:[#allocation2 + $0x4a4] sm:$0xf0] }
 0x1c4   :  { %1418 = vmatpush.bf16.msrb.mxu0 %v2755_v49  ;;  %1406 = vmatpush.bf16.msra.mxu3 %v2807_v43  ;;  %v2731_v42 = vor.u32 %v3290_v37, %v2728_v39  ;;  %v2775_v43 = vor.u32 %v3303_v41, %v2774_v40  ;;  %v3289_v48 = vld [vmem:[#allocation2 + $0x434] sm:$0xf0]  ;;  %v3288_v49 = vld [vmem:[#allocation2 + $0x434] sm:$0xf]  ;;  %v2927_v37 = vld [vmem:[#allocation2 + $0x5d0] sm:$0xf] }
 0x1c5   :  { %v2723_v52 = vor.u32 %v3288_v49, %v2720_v51  ;;  %v3340_v39 = vld [vmem:[#allocation2 + $0x5d4] sm:$0xf]  ;;  %v2929_v40 = vld [vmem:[#allocation2 + $0x5d8] sm:$0xf0]  ;;  %v2871_v41 = vld [vmem:[#allocation2 + $0x560] sm:$0xf] }
 0x1c6   :  { %v3339_v49 = vld [vmem:[#allocation2 + $0x5c4] sm:$0xf0]  ;;  %v2863_v51 = vld [vmem:[#allocation2 + $0x550] sm:$0xf] }
 0x1c7   :  { %1432 = vmatpush.bf16.msrb.mxu1 %v2811_v47  ;;  %1393 = vmatpush.bf16.msra.mxu2 %v2743_v56  ;;  %v2718_v47 = vld [vmem:[#allocation2 + $0x430] sm:$0xf]  ;;  %v3300_v56 = vld [vmem:[#allocation2 + $0x494] sm:$0xf] }
 0x1c8   :  { %1419 = vmatpush.bf16.msrb.mxu0 %v2747_v60  ;;  %1407 = vmatpush.bf16.msra.mxu3 %v2799_v59  ;;  %v2719_v50 = vor.u32 %v3289_v48, %v2718_v47  ;;  %v2771_v58 = vor.u32 %v3300_v56, %v2768_v57  ;;  %v2710_v59 = vld [vmem:[#allocation2 + $0x420] sm:$0xf]  ;;  %v3287_v60 = vld [vmem:[#allocation2 + $0x424] sm:$0xf0]  ;;  %v2876_v47 = vor.u32 %v3326_v44, %v2873_v45  ;;  %v2865_v56 = vld [vmem:[#allocation2 + $0x558] sm:$0xf0] }
 0x1c9   :  { %v2711_v62 = vor.u32 %v3287_v60, %v2710_v59  ;;  %v2919_v48 = vld [vmem:[#allocation2 + $0x5c0] sm:$0xf]  ;;  %v2562_v60 = vld [vmem:[%s3630_s4 + $0x6] sm:$0x3]  ;;  %v2897_v44 = vld [vmem:[#allocation2 + $0x598] sm:$0xf0] }
 0x1cb   :  { %1433 = vmatpush.bf16.msrb.mxu1 %v2803_v63  ;;  %1394 = vmatpush.bf16.msra.mxu2 %v2735_v6  ;;  %v2712_v63 = vld [vmem:[#allocation2 + $0x428] sm:$0xf0]  ;;  %v2763_v6 = vor.u32 %v3298_v3, %v2760_v5  ;;  %v972_v5 = vperm.slane %v2562_v60, 0 }
 0x1cc   :  { %1420 = vmatpush.bf16.msrb.mxu0 %v2739_v7  ;;  %1408 = vmatpush.bf16.msra.mxu3 %v2791_v10  ;;  %v2715_v0 = vor.u32 %v3286_v61, %v2712_v63  ;;  %v2702_v7 = vld [vmem:[#allocation2 + $0x410] sm:$0xf]  ;;  %v3284_v10 = vld [vmem:[#allocation2 + $0x414] sm:$0xf]  ;;  %v2920_v61 = vor.u32 %v3339_v49, %v2919_v48  ;;  %v973_v63 = vperm.slane %v2562_v60, 1 }
 0x1cd   :  { %v3318_v48 = vld [vmem:[#allocation2 + $0x524] sm:$0xf] }
 0x1cf   :  { %1434 = vmatpush.bf16.msrb.mxu1 %v2795_v11  ;;  %1395 = vmatpush.bf16.msra.mxu2 %v2727_v38  ;;  %v2704_v11 = vld [vmem:[#allocation2 + $0x418] sm:$0xf0]  ;;  %v3341_v38 = vld [vmem:[#allocation2 + $0x5d4] sm:$0xf0] }
 0x1d0   :  { %1409 = vmatpush.bf16.msra.mxu3 %v2783_v32  ;;  %1421 = vmatpush.bf16.msrb.mxu0 %v2731_v42  ;;  %v3328_v32 = vld [vmem:[#allocation2 + $0x574] sm:$0xf]  ;;  %v3327_v42 = vld [vmem:[#allocation2 + $0x564] sm:$0xf0] }
 0x1d1   :  { %v2884_v36 = vor.u32 %v3328_v32, %v2881_v33  ;;  %v2905_v32 = vld [vmem:[#allocation2 + $0x5a8] sm:$0xf0] }
 0x1d2   :  { %v2908_v33 = vor.u32 %v3334_v31, %v2905_v32  ;;  %v3358_v31 = vld [vmem:[#allocation2 + $0x664] sm:$0xf]  ;;  %v3002_v32 = vld [vmem:[#allocation2 + $0x668] sm:$0xf0] }
 0x1d3   :  { %1435 = vmatpush.bf16.msrb.mxu1 %v2787_v34  ;;  %1396 = vmatpush.bf16.msra.mxu2 %v2719_v50  ;;  %v2932_v50 = vor.u32 %v3340_v39, %v2929_v40  ;;  %v2895_v40 = vld [vmem:[#allocation2 + $0x590] sm:$0xf] }
 0x1d4   :  { %1410 = vmatpush.bf16.msra.mxu3 %v2775_v43  ;;  %1422 = vmatpush.bf16.msrb.mxu0 %v2723_v52  ;;  %v2872_v43 = vor.u32 %v3327_v42, %v2871_v41  ;;  %v3325_v52 = vld [vmem:[#allocation2 + $0x554] sm:$0xf0] }
 0x1d5   :  { %v2864_v57 = vor.u32 %v3325_v52, %v2863_v51  ;;  %v3333_v41 = vld [vmem:[#allocation2 + $0x594] sm:$0xf0]  ;;  %v2887_v52 = vld [vmem:[#allocation2 + $0x580] sm:$0xf] }
 0x1d6   :  { %v2896_v42 = vor.u32 %v3333_v41, %v2895_v40  ;;  %v3356_v40 = vld [vmem:[#allocation2 + $0x654] sm:$0xf]  ;;  %v3370_v41 = vld [vmem:[#allocation2 + $0x6c4] sm:$0xf] }
 0x1d7   :  { %1436 = vmatpush.bf16.msrb.mxu1 %v2779_v46  ;;  %1397 = vmatpush.bf16.msra.mxu2 %v2711_v62  ;;  %v2928_v46 = vor.u32 %v3341_v38, %v2927_v37  ;;  %v2849_v38 = vld [vmem:[#allocation2 + $0x538] sm:$0xf0] }
 0x1d8   :  { %1411 = vmatpush.bf16.msra.mxu3 %v2767_v55  ;;  %1423 = vmatpush.bf16.msrb.mxu0 %v2715_v0  ;;  %v2921_v55 = vld [vmem:[#allocation2 + $0x5c8] sm:$0xf0] }
 0x1d9   :  { %v2924_v62 = vor.u32 %v3338_v54, %v2921_v55  ;;  %v3330_v54 = vld [vmem:[#allocation2 + $0x584] sm:$0xf] }
 0x1db   :  { %1437 = vmatpush.bf16.msrb.mxu1 %v2771_v58  ;;  %v2868_v58 = vor.u32 %v3324_v53, %v2865_v56  ;;  %v3331_v53 = vld [vmem:[#allocation2 + $0x584] sm:$0xf0]  ;;  %v2889_v56 = vld [vmem:[#allocation2 + $0x588] sm:$0xf0] }
 0x1dc   :  { %1412 = vmatpush.bf16.msra.mxu3 %v2759_v4  ;;  %v2888_v55 = vor.u32 %v3331_v53, %v2887_v52 }
 0x1df   :  { %1438 = vmatpush.bf16.msrb.mxu1 %v2763_v6 }
 0x239   :  { %v928_v8 = vpop.f32.mrf.mxu1 }
 0x23f   :  { %v902_v13 = vpop.f32.mrf.mxu3  ;;  %v915_v14 = vpop.f32.mrf.mxu0 }
 0x240   :  { %v916_v15 = vadd.f32 %v915_v14, %v717_v12  ;;  %v2707_v12 = vor.u32 %v3284_v10, %v2704_v11  ;;  %v3283_v14 = vld [vmem:[#allocation2 + $0x404] sm:$0xf0] }
 0x241   :  { %v930_v16 = vpop.f32.mrf.mxu1 }
 0x242   :  { %v929_v17 = vadd.f32 %v928_v8, %v916_v15  ;;  %v3285_v8 = vld [vmem:[#allocation2 + $0x414] sm:$0xf0]  ;;  %1424 = vmatpush.bf16.msrb.mxu0 %v2707_v12  ;;  %v3282_v15 = vld [vmem:[#allocation2 + $0x404] sm:$0xf] }
 0x243   :  { %v2703_v9 = vor.u32 %v3285_v8, %v2702_v7 }
 0x244   :  { %v933_v19 = vmax.f32 %v929_v17, 0.0  ;;  %v2696_v17 = vld [vmem:[#allocation2 + $0x408] sm:$0xf0] }
 0x245   :  { %v889_v20 = vpop.f32.mrf.mxu2  ;;  %1398 = vmatpush.bf16.msra.mxu2 %v2703_v9 }
 0x246   :  { %v935_v21 = vpack.c.bf16 %v933_v19, %v933_v19  ;;  %v890_v22 = vadd.f32 %v889_v20, %v716_v18  ;;  %v2699_v18 = vor.u32 %v3282_v15, %v2696_v17  ;;  %v2943_v19 = vld [vmem:[#allocation2 + $0x5f0] sm:$0xf]  ;;  %v3345_v20 = vld [vmem:[#allocation2 + $0x5f4] sm:$0xf0] }
 0x247   :  { %v904_v23 = vpop.f32.mrf.mxu3  ;;  %v917_v24 = vpop.f32.mrf.mxu0  ;;  %v3337_v17 = vld [vmem:[#allocation2 + $0x5b4] sm:$0xf0] }
 0x248   :  { %v903_v25 = vadd.f32 %v902_v13, %v890_v22  ;;  %1157 = vmatmul.bf16.vlgmr.msrb.gmra.mxu3 %v935_v21  ;;  %1183 = vmatmul.bf16.vlgmr.msra.gmra.mxu1 %v935_v21  ;;  %v2694_v13 = vld [vmem:[#allocation2 + $0x400] sm:$0xf]  ;;  %v3344_v21 = vld [vmem:[#allocation2 + $0x5f4] sm:$0xf]  ;;  %v2944_v22 = vor.u32 %v3345_v20, %v2943_v19  ;;  %v2945_v23 = vld [vmem:[#allocation2 + $0x5f8] sm:$0xf0] }
 0x249   :  { %v2695_v16 = vor.u32 %v3283_v14, %v2694_v13  ;;  %1425 = vmatpush.bf16.msrb.mxu0 %v2699_v18  ;;  %v2935_v24 = vld [vmem:[#allocation2 + $0x5e0] sm:$0xf]  ;;  %v3336_v18 = vld [vmem:[#allocation2 + $0x5b4] sm:$0xf]  ;;  %v2913_v20 = vld [vmem:[#allocation2 + $0x5b8] sm:$0xf0] }
 0x24a   :  { %v932_v26 = vmax.f32 %v903_v25, 0.0  ;;  %v3343_v25 = vld [vmem:[#allocation2 + $0x5e4] sm:$0xf0]  ;;  %1661 = vmatpush.bf16.msrb.mxu3 %v2944_v22  ;;  %v2855_v22 = vld [vmem:[#allocation2 + $0x540] sm:$0xf] }
 0x24b   :  { %1399 = vmatpush.bf16.msra.mxu2 %v2695_v16  ;;  %v2936_v30 = vor.u32 %v3343_v25, %v2935_v24  ;;  %v2911_v16 = vld [vmem:[#allocation2 + $0x5b0] sm:$0xf]  ;;  %v3322_v24 = vld [vmem:[#allocation2 + $0x544] sm:$0xf] }
 0x24c   :  { %v934_v27 = vpack.c.bf16 %v932_v26, %v932_v26  ;;  %v2948_v26 = vor.u32 %v3344_v21, %v2945_v23  ;;  %v2912_v19 = vor.u32 %v3337_v17, %v2911_v16  ;;  %v2916_v21 = vor.u32 %v3336_v18, %v2913_v20  ;;  %v3323_v23 = vld [vmem:[#allocation2 + $0x544] sm:$0xf0]  ;;  %v3008_v16 = vld [vmem:[#allocation2 + $0x670] sm:$0xf]  ;;  %v3361_v18 = vld [vmem:[#allocation2 + $0x674] sm:$0xf0] }
 0x24d   :  { %v891_v28 = vpop.f32.mrf.mxu2  ;;  %v2856_v25 = vor.u32 %v3323_v23, %v2855_v22  ;;  %v3010_v20 = vld [vmem:[#allocation2 + $0x678] sm:$0xf0]  ;;  %v3009_v22 = vor.u32 %v3361_v18, %v3008_v16  ;;  %v3366_v18 = vld [vmem:[#allocation2 + $0x6a4] sm:$0xf] }
 0x24e   :  { %1144 = vmatmul.bf16.vlgmr.msrb.gmra.mxu2 %v934_v27  ;;  %1170 = vmatmul.bf16.vlgmr.msra.gmra.mxu0 %v934_v27  ;;  %v3342_v27 = vld [vmem:[#allocation2 + $0x5e4] sm:$0xf]  ;;  %v2937_v28 = vld [vmem:[#allocation2 + $0x5e8] sm:$0xf0] }
 0x24f   :  { %1687 = vmatpush.bf16.msra.mxu1 %v2948_v26  ;;  %v2940_v34 = vor.u32 %v3342_v27, %v2937_v28  ;;  %1648 = vmatpush.bf16.msrb.mxu2 %v2880_v35  ;;  %v2857_v26 = vld [vmem:[#allocation2 + $0x548] sm:$0xf0]  ;;  %v2903_v27 = vld [vmem:[#allocation2 + $0x5a0] sm:$0xf]  ;;  %v3335_v28 = vld [vmem:[#allocation2 + $0x5a4] sm:$0xf0] }
 0x250   :  { %1674 = vmatpush.bf16.msra.mxu0 %v2884_v36  ;;  %1662 = vmatpush.bf16.msrb.mxu3 %v2936_v30  ;;  %v2860_v29 = vor.u32 %v3322_v24, %v2857_v26  ;;  %v2904_v30 = vor.u32 %v3335_v28, %v2903_v27  ;;  %v3321_v35 = vld [vmem:[#allocation2 + $0x534] sm:$0xf0]  ;;  %v3320_v36 = vld [vmem:[#allocation2 + $0x534] sm:$0xf]  ;;  %v3056_v24 = vld [vmem:[#allocation2 + $0x6d0] sm:$0xf] }
 0x251   :  { %v2852_v39 = vor.u32 %v3320_v36, %v2849_v38  ;;  %v3372_v26 = vld [vmem:[#allocation2 + $0x6d4] sm:$0xf]  ;;  %v3058_v27 = vld [vmem:[#allocation2 + $0x6d8] sm:$0xf0]  ;;  %v3000_v28 = vld [vmem:[#allocation2 + $0x660] sm:$0xf] }
 0x252   :  { %v3371_v36 = vld [vmem:[#allocation2 + $0x6c4] sm:$0xf0]  ;;  %v2992_v38 = vld [vmem:[#allocation2 + $0x650] sm:$0xf] }
 0x253   :  { %1688 = vmatpush.bf16.msra.mxu1 %v2940_v34  ;;  %1649 = vmatpush.bf16.msrb.mxu2 %v2872_v43  ;;  %v2847_v34 = vld [vmem:[#allocation2 + $0x530] sm:$0xf]  ;;  %v3332_v43 = vld [vmem:[#allocation2 + $0x594] sm:$0xf] }
 0x254   :  { %1675 = vmatpush.bf16.msra.mxu0 %v2876_v47  ;;  %1663 = vmatpush.bf16.msrb.mxu3 %v2928_v46  ;;  %v2848_v37 = vor.u32 %v3321_v35, %v2847_v34  ;;  %v2900_v45 = vor.u32 %v3332_v43, %v2897_v44  ;;  %v2839_v46 = vld [vmem:[#allocation2 + $0x520] sm:$0xf]  ;;  %v3319_v47 = vld [vmem:[#allocation2 + $0x524] sm:$0xf0]  ;;  %v3005_v34 = vor.u32 %v3358_v31, %v3002_v32  ;;  %v2994_v43 = vld [vmem:[#allocation2 + $0x658] sm:$0xf0] }
 0x255   :  { %v2840_v49 = vor.u32 %v3319_v47, %v2839_v46  ;;  %v3048_v35 = vld [vmem:[#allocation2 + $0x6c0] sm:$0xf]  ;;  %v2691_v47 = vld [vmem:[%s3630_s4 + $0x8] sm:$0x3]  ;;  %v3026_v31 = vld [vmem:[#allocation2 + $0x698] sm:$0xf0] }
 0x257   :  { %1689 = vmatpush.bf16.msra.mxu1 %v2932_v50  ;;  %1650 = vmatpush.bf16.msrb.mxu2 %v2864_v57  ;;  %v2841_v50 = vld [vmem:[#allocation2 + $0x528] sm:$0xf0]  ;;  %v2892_v57 = vor.u32 %v3330_v54, %v2889_v56  ;;  %v1228_v56 = vperm.slane %v2691_v47, 0 }
 0x258   :  { %1676 = vmatpush.bf16.msra.mxu0 %v2868_v58  ;;  %1664 = vmatpush.bf16.msrb.mxu3 %v2920_v61  ;;  %v2844_v51 = vor.u32 %v3318_v48, %v2841_v50  ;;  %v2831_v58 = vld [vmem:[#allocation2 + $0x510] sm:$0xf]  ;;  %v3316_v61 = vld [vmem:[#allocation2 + $0x514] sm:$0xf]  ;;  %v3049_v48 = vor.u32 %v3371_v36, %v3048_v35  ;;  %v1229_v50 = vperm.slane %v2691_v47, 1 }
 0x259   :  { %v3350_v35 = vld [vmem:[#allocation2 + $0x624] sm:$0xf] }
 0x25b   :  { %1690 = vmatpush.bf16.msra.mxu1 %v2924_v62  ;;  %1651 = vmatpush.bf16.msrb.mxu2 %v2856_v25  ;;  %v2833_v62 = vld [vmem:[#allocation2 + $0x518] sm:$0xf0]  ;;  %v3373_v25 = vld [vmem:[#allocation2 + $0x6d4] sm:$0xf0] }
 0x25c   :  { %1665 = vmatpush.bf16.msrb.mxu3 %v2912_v19  ;;  %1677 = vmatpush.bf16.msra.mxu0 %v2860_v29  ;;  %v3360_v19 = vld [vmem:[#allocation2 + $0x674] sm:$0xf]  ;;  %v3359_v29 = vld [vmem:[#allocation2 + $0x664] sm:$0xf0] }
 0x25d   :  { %v3013_v23 = vor.u32 %v3360_v19, %v3010_v20  ;;  %v3034_v19 = vld [vmem:[#allocation2 + $0x6a8] sm:$0xf0] }
 0x25e   :  { %v3037_v20 = vor.u32 %v3366_v18, %v3034_v19  ;;  %v3389_v19 = vld [vmem:[%s3631_s5 + $0x58] sm:$0xff] }
 0x25f   :  { %1691 = vmatpush.bf16.msra.mxu1 %v2916_v21  ;;  %1652 = vmatpush.bf16.msrb.mxu2 %v2848_v37  ;;  %v3061_v37 = vor.u32 %v3372_v26, %v3058_v27  ;;  %v3024_v27 = vld [vmem:[#allocation2 + $0x690] sm:$0xf] }
 0x260   :  { %1666 = vmatpush.bf16.msrb.mxu3 %v2904_v30  ;;  %1678 = vmatpush.bf16.msra.mxu0 %v2852_v39  ;;  %v3001_v30 = vor.u32 %v3359_v29, %v3000_v28  ;;  %v3357_v39 = vld [vmem:[#allocation2 + $0x654] sm:$0xf0] }
 0x261   :  { %v2993_v44 = vor.u32 %v3357_v39, %v2992_v38  ;;  %v3365_v28 = vld [vmem:[#allocation2 + $0x694] sm:$0xf0]  ;;  %v3016_v39 = vld [vmem:[#allocation2 + $0x680] sm:$0xf] }
 0x262   :  { %v3025_v29 = vor.u32 %v3365_v28, %v3024_v27  ;;  %v3378_v27 = vld [vmem:[%s3631_s5] sm:$0xff] }
 0x263   :  { %1692 = vmatpush.bf16.msra.mxu1 %v2908_v33  ;;  %1653 = vmatpush.bf16.msrb.mxu2 %v2840_v49  ;;  %v3057_v33 = vor.u32 %v3373_v25, %v3056_v24  ;;  %v2978_v25 = vld [vmem:[#allocation2 + $0x638] sm:$0xf0] }
 0x264   :  { %1667 = vmatpush.bf16.msrb.mxu3 %v2896_v42  ;;  %1679 = vmatpush.bf16.msra.mxu0 %v2844_v51  ;;  %v3050_v42 = vld [vmem:[#allocation2 + $0x6c8] sm:$0xf0] }
 0x265   :  { %v3053_v49 = vor.u32 %v3370_v41, %v3050_v42  ;;  %v3362_v41 = vld [vmem:[#allocation2 + $0x684] sm:$0xf] }
 0x267   :  { %1693 = vmatpush.bf16.msra.mxu1 %v2900_v45  ;;  %v2997_v45 = vor.u32 %v3356_v40, %v2994_v43  ;;  %v3363_v40 = vld [vmem:[#allocation2 + $0x684] sm:$0xf0]  ;;  %v3018_v43 = vld [vmem:[#allocation2 + $0x688] sm:$0xf0] }
 0x268   :  { %1668 = vmatpush.bf16.msrb.mxu3 %v2888_v55  ;;  %v3017_v42 = vor.u32 %v3363_v40, %v3016_v39 }
 0x26b   :  { %1694 = vmatpush.bf16.msra.mxu1 %v2892_v57 }
 0x2c5   :  { %v1184_v59 = vpop.f32.mrf.mxu1 }
 0x2cb   :  { %v1158_v0 = vpop.f32.mrf.mxu3  ;;  %v1171_v1 = vpop.f32.mrf.mxu0 }
 0x2cc   :  { %v1172_v2 = vadd.f32 %v1171_v1, %v973_v63  ;;  %v2836_v63 = vor.u32 %v3316_v61, %v2833_v62  ;;  %v3315_v1 = vld [vmem:[#allocation2 + $0x504] sm:$0xf0] }
 0x2cd   :  { %v1186_v3 = vpop.f32.mrf.mxu1 }
 0x2ce   :  { %v1185_v4 = vadd.f32 %v1184_v59, %v1172_v2  ;;  %v3317_v59 = vld [vmem:[#allocation2 + $0x514] sm:$0xf0]  ;;  %1680 = vmatpush.bf16.msra.mxu0 %v2836_v63  ;;  %v3314_v2 = vld [vmem:[#allocation2 + $0x504] sm:$0xf] }
 0x2cf   :  { %v2832_v60 = vor.u32 %v3317_v59, %v2831_v58 }
 0x2d0   :  { %v1189_v6 = vmax.f32 %v1185_v4, 0.0  ;;  %v2825_v4 = vld [vmem:[#allocation2 + $0x508] sm:$0xf0] }
 0x2d1   :  { %v1145_v7 = vpop.f32.mrf.mxu2  ;;  %1654 = vmatpush.bf16.msrb.mxu2 %v2832_v60 }
 0x2d2   :  { %v1191_v8 = vpack.c.bf16 %v1189_v6, %v1189_v6  ;;  %v1146_v9 = vadd.f32 %v1145_v7, %v972_v5  ;;  %v2828_v5 = vor.u32 %v3314_v2, %v2825_v4  ;;  %v3072_v6 = vld [vmem:[#allocation2 + $0x6f0] sm:$0xf]  ;;  %v3377_v7 = vld [vmem:[#allocation2 + $0x6f4] sm:$0xf0] }
 0x2d3   :  { %v1160_v10 = vpop.f32.mrf.mxu3  ;;  %v1173_v11 = vpop.f32.mrf.mxu0  ;;  %v3369_v4 = vld [vmem:[#allocation2 + $0x6b4] sm:$0xf0] }
 0x2d4   :  { %v1159_v12 = vadd.f32 %v1158_v0, %v1146_v9  ;;  %1413 = vmatmul.bf16.vlgmr.msra.gmra.mxu3 %v1191_v8  ;;  %1439 = vmatmul.bf16.vlgmr.msrb.gmra.mxu1 %v1191_v8  ;;  %v2823_v0 = vld [vmem:[#allocation2 + $0x500] sm:$0xf]  ;;  %v3376_v8 = vld [vmem:[#allocation2 + $0x6f4] sm:$0xf]  ;;  %v3073_v9 = vor.u32 %v3377_v7, %v3072_v6  ;;  %v3074_v10 = vld [vmem:[#allocation2 + $0x6f8] sm:$0xf0] }
 0x2d5   :  { %v2824_v3 = vor.u32 %v3315_v1, %v2823_v0  ;;  %1681 = vmatpush.bf16.msra.mxu0 %v2828_v5  ;;  %v3064_v11 = vld [vmem:[#allocation2 + $0x6e0] sm:$0xf]  ;;  %v3368_v5 = vld [vmem:[#allocation2 + $0x6b4] sm:$0xf]  ;;  %v3042_v7 = vld [vmem:[#allocation2 + $0x6b8] sm:$0xf0] }
 0x2d6   :  { %v1188_v13 = vmax.f32 %v1159_v12, 0.0  ;;  %v3375_v12 = vld [vmem:[#allocation2 + $0x6e4] sm:$0xf0]  ;;  %1917 = vmatpush.bf16.msra.mxu3 %v3073_v9  ;;  %v2984_v9 = vld [vmem:[#allocation2 + $0x640] sm:$0xf] }
 0x2d7   :  { %1655 = vmatpush.bf16.msrb.mxu2 %v2824_v3  ;;  %v3065_v17 = vor.u32 %v3375_v12, %v3064_v11  ;;  %v3040_v3 = vld [vmem:[#allocation2 + $0x6b0] sm:$0xf]  ;;  %v3354_v11 = vld [vmem:[#allocation2 + $0x644] sm:$0xf] }
 0x2d8   :  { %v1190_v14 = vpack.c.bf16 %v1188_v13, %v1188_v13  ;;  %v3077_v13 = vor.u32 %v3376_v8, %v3074_v10  ;;  %v3041_v6 = vor.u32 %v3369_v4, %v3040_v3  ;;  %v3045_v8 = vor.u32 %v3368_v5, %v3042_v7  ;;  %v3355_v10 = vld [vmem:[#allocation2 + $0x644] sm:$0xf0] }
 0x2d9   :  { %v1147_v15 = vpop.f32.mrf.mxu2  ;;  %v2985_v12 = vor.u32 %v3355_v10, %v2984_v9 }
 0x2da   :  { %1400 = vmatmul.bf16.vlgmr.msra.gmra.mxu2 %v1190_v14  ;;  %1426 = vmatmul.bf16.vlgmr.msrb.gmra.mxu0 %v1190_v14  ;;  %v3374_v14 = vld [vmem:[#allocation2 + $0x6e4] sm:$0xf]  ;;  %v3066_v15 = vld [vmem:[#allocation2 + $0x6e8] sm:$0xf0] }
 0x2db   :  { %1943 = vmatpush.bf16.msrb.mxu1 %v3077_v13  ;;  %v3069_v21 = vor.u32 %v3374_v14, %v3066_v15  ;;  %1904 = vmatpush.bf16.msra.mxu2 %v3009_v22  ;;  %v2986_v13 = vld [vmem:[#allocation2 + $0x648] sm:$0xf0]  ;;  %v3032_v14 = vld [vmem:[#allocation2 + $0x6a0] sm:$0xf]  ;;  %v3367_v15 = vld [vmem:[#allocation2 + $0x6a4] sm:$0xf0] }
 0x2dc   :  { %1930 = vmatpush.bf16.msrb.mxu0 %v3013_v23  ;;  %1918 = vmatpush.bf16.msra.mxu3 %v3065_v17  ;;  %v2989_v16 = vor.u32 %v3354_v11, %v2986_v13  ;;  %v3033_v17 = vor.u32 %v3367_v15, %v3032_v14  ;;  %v3353_v22 = vld [vmem:[#allocation2 + $0x634] sm:$0xf0]  ;;  %v3352_v23 = vld [vmem:[#allocation2 + $0x634] sm:$0xf] }
 0x2dd   :  { %v2981_v26 = vor.u32 %v3352_v23, %v2978_v25  ;;  %v3387_v23 = vld [vmem:[%s3631_s5 + $0x48] sm:$0xff]  ;;  %v3386_v25 = vld [vmem:[%s3631_s5 + $0x40] sm:$0xff] }
 0x2df   :  { %1944 = vmatpush.bf16.msrb.mxu1 %v3069_v21  ;;  %1905 = vmatpush.bf16.msra.mxu2 %v3001_v30  ;;  %v2976_v21 = vld [vmem:[#allocation2 + $0x630] sm:$0xf]  ;;  %v3364_v30 = vld [vmem:[#allocation2 + $0x694] sm:$0xf] }
 0x2e0   :  { %1931 = vmatpush.bf16.msrb.mxu0 %v3005_v34  ;;  %1919 = vmatpush.bf16.msra.mxu3 %v3057_v33  ;;  %v2977_v24 = vor.u32 %v3353_v22, %v2976_v21  ;;  %v3029_v32 = vor.u32 %v3364_v30, %v3026_v31  ;;  %v2968_v33 = vld [vmem:[#allocation2 + $0x620] sm:$0xf]  ;;  %v3351_v34 = vld [vmem:[#allocation2 + $0x624] sm:$0xf0]  ;;  %v3388_v21 = vld [vmem:[%s3631_s5 + $0x50] sm:$0xff] }
 0x2e1   :  { %v2969_v36 = vor.u32 %v3351_v34, %v2968_v33  ;;  %v3381_v22 = vld [vmem:[%s3631_s5 + $0x18] sm:$0xff] }
 0x2e3   :  { %1945 = vmatpush.bf16.msrb.mxu1 %v3061_v37  ;;  %1906 = vmatpush.bf16.msra.mxu2 %v2993_v44  ;;  %v2970_v37 = vld [vmem:[#allocation2 + $0x628] sm:$0xf0]  ;;  %v3021_v44 = vor.u32 %v3362_v41, %v3018_v43 }
 0x2e4   :  { %1932 = vmatpush.bf16.msrb.mxu0 %v2997_v45  ;;  %1920 = vmatpush.bf16.msra.mxu3 %v3049_v48  ;;  %v2973_v38 = vor.u32 %v3350_v35, %v2970_v37  ;;  %v2960_v45 = vld [vmem:[#allocation2 + $0x610] sm:$0xf]  ;;  %v3348_v48 = vld [vmem:[#allocation2 + $0x614] sm:$0xf] }
 0x2e7   :  { %1946 = vmatpush.bf16.msrb.mxu1 %v3053_v49  ;;  %1907 = vmatpush.bf16.msra.mxu2 %v2985_v12  ;;  %v2962_v49 = vld [vmem:[#allocation2 + $0x618] sm:$0xf0] }
 0x2e8   :  { %1921 = vmatpush.bf16.msra.mxu3 %v3041_v6  ;;  %1933 = vmatpush.bf16.msrb.mxu0 %v2989_v16 }
 0x2eb   :  { %1947 = vmatpush.bf16.msrb.mxu1 %v3045_v8  ;;  %1908 = vmatpush.bf16.msra.mxu2 %v2977_v24  ;;  %v3380_v24 = vld [vmem:[%s3631_s5 + $0x10] sm:$0xff] }
 0x2ec   :  { %1922 = vmatpush.bf16.msra.mxu3 %v3033_v17  ;;  %1934 = vmatpush.bf16.msrb.mxu0 %v2981_v26  ;;  %v3379_v26 = vld [vmem:[%s3631_s5 + $0x8] sm:$0xff] }
 0x2ef   :  { %1948 = vmatpush.bf16.msrb.mxu1 %v3037_v20  ;;  %1909 = vmatpush.bf16.msra.mxu2 %v2969_v36  ;;  %v3382_v20 = vld [vmem:[%s3631_s5 + $0x20] sm:$0xff] }
 0x2f0   :  { %1923 = vmatpush.bf16.msra.mxu3 %v3025_v29  ;;  %1935 = vmatpush.bf16.msrb.mxu0 %v2973_v38  ;;  %v2949_v29 = vld [vmem:[%s3630_s4 + $0xc] sm:$0x3] }
 0x2f1   :  { %v1741_v30 = vperm.slane %v2949_v29, 1  ;;  %v1740_v36 = vperm.slane %v2949_v29, 0 }
 0x2f3   :  { %1949 = vmatpush.bf16.msrb.mxu1 %v3029_v32 }
 0x2f4   :  { %1924 = vmatpush.bf16.msra.mxu3 %v3017_v42 }
 0x2f7   :  { %1950 = vmatpush.bf16.msrb.mxu1 %v3021_v44 }
 0x351   :  { %v1440_v46 = vpop.f32.mrf.mxu1 }
 0x357   :  { %v1414_v51 = vpop.f32.mrf.mxu3  ;;  %v1427_v52 = vpop.f32.mrf.mxu0 }
 0x358   :  { %v1428_v53 = vadd.f32 %v1427_v52, %v1229_v50  ;;  %v2965_v50 = vor.u32 %v3348_v48, %v2962_v49  ;;  %v3347_v52 = vld [vmem:[#allocation2 + $0x604] sm:$0xf0]  ;;  %v3397_v48 = vld [vmem:[%s3632_s6] ss:$0 sm:$0xff] }
 0x359   :  { %v1442_v54 = vpop.f32.mrf.mxu1 }
 0x35a   :  { %v1441_v55 = vadd.f32 %v1440_v46, %v1428_v53  ;;  %v3349_v46 = vld [vmem:[#allocation2 + $0x614] sm:$0xf0]  ;;  %1936 = vmatpush.bf16.msrb.mxu0 %v2965_v50  ;;  %v3346_v53 = vld [vmem:[#allocation2 + $0x604] sm:$0xf] }
 0x35b   :  { %v2961_v47 = vor.u32 %v3349_v46, %v2960_v45 }
 0x35c   :  { %v1445_v57 = vmax.f32 %v1441_v55, 0.0  ;;  %v2954_v55 = vld [vmem:[#allocation2 + $0x608] sm:$0xf0] }
 0x35d   :  { %v1401_v58 = vpop.f32.mrf.mxu2  ;;  %1910 = vmatpush.bf16.msra.mxu2 %v2961_v47 }
 0x35e   :  { %v1447_v59 = vpack.c.bf16 %v1445_v57, %v1445_v57  ;;  %v1402_v60 = vadd.f32 %v1401_v58, %v1228_v56  ;;  %v2957_v56 = vor.u32 %v3346_v53, %v2954_v55  ;;  %v3393_v57 = vld [vmem:[%s3631_s5 + $0x78] sm:$0xff] }
 0x35f   :  { %v1416_v61 = vpop.f32.mrf.mxu3  ;;  %v1429_v62 = vpop.f32.mrf.mxu0  ;;  %v3385_v58 = vld [vmem:[%s3631_s5 + $0x38] sm:$0xff] }
 0x360   :  { %v1415_v63 = vadd.f32 %v1414_v51, %v1402_v60  ;;  %1669 = vmatmul.bf16.vlgmr.msrb.gmra.mxu3 %v1447_v59  ;;  %1695 = vmatmul.bf16.vlgmr.msra.gmra.mxu1 %v1447_v59  ;;  %v2952_v51 = vld [vmem:[#allocation2 + $0x600] sm:$0xf]  ;;  %v3392_v59 = vld [vmem:[%s3631_s5 + $0x70] sm:$0xff]  ;;  %v3391_v61 = vld [vmem:[%s3631_s5 + $0x68] sm:$0xff] }
 0x361   :  { %v2953_v54 = vor.u32 %v3347_v52, %v2952_v51  ;;  %1937 = vmatpush.bf16.msrb.mxu0 %v2957_v56  ;;  %2105 = vmatpush.bf16.msrb.mxu3 %v3393_v57  ;;  %v3384_v60 = vld [vmem:[%s3631_s5 + $0x30] sm:$0xff]  ;;  %v3383_v62 = vld [vmem:[%s3631_s5 + $0x28] sm:$0xff] }
 0x362   :  { %v1444_v0 = vmax.f32 %v1415_v63, 0.0  ;;  %v3390_v63 = vld [vmem:[%s3631_s5 + $0x60] sm:$0xff] }
 0x363   :  { %1911 = vmatpush.bf16.msra.mxu2 %v2953_v54 }
 0x364   :  { %v1446_v1 = vpack.c.bf16 %v1444_v0, %v1444_v0 }
 0x365   :  { %v1403_v2 = vpop.f32.mrf.mxu2  ;;  %2106 = vmatpush.bf16.msrb.mxu3 %v3392_v59 }
 0x366   :  { %1656 = vmatmul.bf16.vlgmr.msrb.gmra.mxu2 %v1446_v1  ;;  %1682 = vmatmul.bf16.vlgmr.msra.gmra.mxu0 %v1446_v1  ;;  %v2820_v1 = vld [vmem:[%s3630_s4 + $0xa] sm:$0x3] }
 0x367   :  { %2092 = vmatpush.bf16.msrb.mxu2 %v3385_v58  ;;  %v1485_v2 = vperm.slane %v2820_v1, 1  ;;  %v1484_v8 = vperm.slane %v2820_v1, 0 }
 0x369   :  { %2107 = vmatpush.bf16.msrb.mxu3 %v3391_v61 }
 0x36b   :  { %2093 = vmatpush.bf16.msrb.mxu2 %v3384_v60 }
 0x36d   :  { %2108 = vmatpush.bf16.msrb.mxu3 %v3390_v63 }
 0x36f   :  { %2094 = vmatpush.bf16.msrb.mxu2 %v3383_v62 }
 0x371   :  { %2109 = vmatpush.bf16.msrb.mxu3 %v3389_v19 }
 0x373   :  { %2095 = vmatpush.bf16.msrb.mxu2 %v3382_v20 }
 0x375   :  { %2110 = vmatpush.bf16.msrb.mxu3 %v3388_v21 }
 0x377   :  { %2096 = vmatpush.bf16.msrb.mxu2 %v3381_v22 }
 0x379   :  { %2111 = vmatpush.bf16.msrb.mxu3 %v3387_v23 }
 0x37b   :  { %2097 = vmatpush.bf16.msrb.mxu2 %v3380_v24 }
 0x37d   :  { %2112 = vmatpush.bf16.msrb.mxu3 %v3386_v25 }
 0x37f   :  { %2098 = vmatpush.bf16.msrb.mxu2 %v3379_v26 }
 0x383   :  { %2099 = vmatpush.bf16.msrb.mxu2 %v3378_v27 }
 0x3dd   :  { %v1696_v0 = vpop.f32.mrf.mxu1 }
 0x3e3   :  { %v1670_v3 = vpop.f32.mrf.mxu3  ;;  %v1683_v4 = vpop.f32.mrf.mxu0 }
 0x3e4   :  { %v1684_v5 = vadd.f32 %v1683_v4, %v1485_v2 }
 0x3e5   :  { %v1698_v6 = vpop.f32.mrf.mxu1 }
 0x3e6   :  { %v1697_v7 = vadd.f32 %v1696_v0, %v1684_v5 }
 0x3e8   :  { %v1701_v9 = vmax.f32 %v1697_v7, 0.0 }
 0x3e9   :  { %v1657_v10 = vpop.f32.mrf.mxu2 }
 0x3ea   :  { %v1703_v11 = vpack.c.bf16 %v1701_v9, %v1701_v9  ;;  %v1658_v12 = vadd.f32 %v1657_v10, %v1484_v8 }
 0x3eb   :  { %v1672_v13 = vpop.f32.mrf.mxu3  ;;  %v1685_v14 = vpop.f32.mrf.mxu0 }
 0x3ec   :  { %v1671_v15 = vadd.f32 %v1670_v3, %v1658_v12  ;;  %1925 = vmatmul.bf16.vlgmr.msra.gmra.mxu3 %v1703_v11  ;;  %1951 = vmatmul.bf16.vlgmr.msrb.gmra.mxu1 %v1703_v11 }
 0x3ee   :  { %v1700_v16 = vmax.f32 %v1671_v15, 0.0 }
 0x3f0   :  { %v1702_v17 = vpack.c.bf16 %v1700_v16, %v1700_v16 }
 0x3f1   :  { %v1659_v18 = vpop.f32.mrf.mxu2 }
 0x3f2   :  { %1912 = vmatmul.bf16.vlgmr.msra.gmra.mxu2 %v1702_v17  ;;  %1938 = vmatmul.bf16.vlgmr.msrb.gmra.mxu0 %v1702_v17 }
 0x469   :  { %v1952_v28 = vpop.f32.mrf.mxu1 }
 0x46f   :  { %v1926_v31 = vpop.f32.mrf.mxu3  ;;  %v1939_v32 = vpop.f32.mrf.mxu0 }
 0x470   :  { %v1940_v33 = vadd.f32 %v1939_v32, %v1741_v30 }
 0x471   :  { %v1954_v34 = vpop.f32.mrf.mxu1 }
 0x472   :  { %v1953_v35 = vadd.f32 %v1952_v28, %v1940_v33 }
 0x474   :  { %v1957_v37 = vmax.f32 %v1953_v35, 0.0 }
 0x475   :  { %v1913_v38 = vpop.f32.mrf.mxu2 }
 0x476   :  { %v1959_v39 = vpack.c.bf16 %v1957_v37, %v1957_v37  ;;  %v1914_v40 = vadd.f32 %v1913_v38, %v1740_v36 }
 0x477   :  { %v1928_v41 = vpop.f32.mrf.mxu3  ;;  %v1941_v42 = vpop.f32.mrf.mxu0 }
 0x478   :  { %v1927_v43 = vadd.f32 %v1926_v31, %v1914_v40  ;;  %2113 = vmatmul.bf16.vlgmr.msrb.gmra.mxu3 %v1959_v39 }
 0x47a   :  { %v1956_v44 = vmax.f32 %v1927_v43, 0.0 }
 0x47c   :  { %v1958_v45 = vpack.c.bf16 %v1956_v44, %v1956_v44 }
 0x47d   :  { %v1915_v46 = vpop.f32.mrf.mxu2 }
 0x47e   :  { %2100 = vmatmul.bf16.vlgmr.msrb.gmra.mxu2 %v1958_v45 }
 0x4fb   :  { %v2114_v47 = vpop.f32.mrf.mxu3 }
 0x501   :  { %v2101_v49 = vpop.f32.mrf.mxu2 }
 0x502   :  { %v2102_v50 = vadd.f32 %v3397_v48, %v2101_v49 }
 0x503   :  { %v2116_v51 = vpop.f32.mrf.mxu3 }
 0x504   :  { %v2115_v52 = vadd.f32 %v2114_v47, %v2102_v50 }
 0x506   :  { %v2118_v53 = vmax.f32 %v2115_v52, 0.0 }
 0x508   :  { %2120 = vst.msk [vmem:[%s3633_s7] sm:$0x3] %vm2119_vm2, %v2118_v53 }
 0x509   :  { %v2103_v54 = vpop.f32.mrf.mxu2 }
 0x50a   :  { %2125 = vsyncpa [#allocation3], 1 }

</bundles_post_ra>
